<compile_context>
chip_gen: v6e
topology: v6e:2x2x1
jax: 0.10.0
libtpu: 0.0.40
codegen_flags: <defaults>
</compile_context>

<pallas_src>
import functools

import jax
import jax.numpy as jnp
from jax.experimental import pallas as pl
from jax.experimental.pallas import tpu as pltpu


def _round_up(x, m):
    return ((x + m - 1) // m) * m


def _chain(v0_bf16, W, Wt, hb, vb, k, uh_fn, uv_fn):
    """Unrolled CD-k Gibbs chain shared by both kernel variants.

    uh_fn(t, shape) / uv_fn(t, shape) return U[0,1) tensors for the t-th
    hidden / visible sampling step.
    """
    def v_to_h(v_b, t):
        # F.linear(v, W, h_bias): (TB, n_vis) @ (n_vis, n_hid) on the MXU.
        p = jax.nn.sigmoid(
            jnp.dot(v_b, Wt, preferred_element_type=jnp.float32) + hb)
        return (p > uh_fn(t, p.shape)).astype(jnp.bfloat16)

    def h_to_v(h_b, t):
        # F.linear(h, W.T, v_bias): (TB, n_hid) @ (n_hid, n_vis) on the MXU.
        p = jax.nn.sigmoid(
            jnp.dot(h_b, W, preferred_element_type=jnp.float32) + vb)
        return (p > uv_fn(t, p.shape)).astype(jnp.bfloat16)

    h_ = v_to_h(v0_bf16, 0)
    v_ = v0_bf16
    for t in range(k):                    # static k -> fully unrolled
        v_ = h_to_v(h_, t)
        if t + 1 < k:                     # final v_to_h in the reference is dead
            h_ = v_to_h(v_, t + 1)        # code for forward()'s return value
    return v_


def _rbm_kernel_prng(seed_ref, v_ref, w_ref, wt_ref, hb_ref, vb_ref,
                     out_ref, *, k):
    # Per-tile seeding keeps parallel grid tiles (and megacore shards) on
    # independent streams.
    pltpu.prng_seed(seed_ref[0], pl.program_id(0))

    tb = v_ref.shape[0]
    n_hid, n_vis = w_ref.shape
    W, Wt = w_ref[...], wt_ref[...]
    # Hoist bias broadcasts out of the unrolled chain (JAX does not CSE them).
    hb = jnp.broadcast_to(hb_ref[...], (tb, n_hid))
    vb = jnp.broadcast_to(vb_ref[...], (tb, n_vis))

    def uniform(_, shape):
        bits = pltpu.prng_random_bits(shape)
        # 23 low bits as the mantissa of a float in [1, 2), then shift to
        # [0, 1).  Pure bitwise + bitcast: no int->float conversion needed and
        # independent of the bits dtype (int32 vs uint32).
        fbits = (bits & 0x007FFFFF) | 0x3F800000
        return pltpu.bitcast(fbits, jnp.float32) - 1.0

    v0 = v_ref[...].astype(jnp.bfloat16)  # binary(ish) input, exact in bf16
    v_ = _chain(v0, W, Wt, hb, vb, k, uniform, uniform)
    out_ref[...] = v_.astype(out_ref.dtype)


def _rbm_kernel_hostu(v_ref, w_ref, wt_ref, hb_ref, vb_ref, uh_ref, uv_ref,
                      out_ref, *, k):
    # Fallback: uniforms streamed from HBM (previously validated design).
    tb = v_ref.shape[0]
    n_hid, n_vis = w_ref.shape
    W, Wt = w_ref[...], wt_ref[...]
    hb = jnp.broadcast_to(hb_ref[...], (tb, n_hid))
    vb = jnp.broadcast_to(vb_ref[...], (tb, n_vis))

    v0 = v_ref[...].astype(jnp.bfloat16)
    v_ = _chain(v0, W, Wt, hb, vb, k,
                lambda t, s: uh_ref[t], lambda t, s: uv_ref[t])
    out_ref[...] = v_.astype(out_ref.dtype)


def rbm_forward(initial_v, W, v_bias, h_bias, *, k=5, seed=0):
    """Returns (initial_v, v_) matching RBM.forward."""
    assert k >= 1
    B, n_vis = initial_v.shape
    n_hid = W.shape[0]
    f32 = jnp.float32

    # Lane-dense padding.
    n_vis_p = _round_up(n_vis, 128)
    n_hid_p = _round_up(n_hid, 128)

    W_p = jnp.pad(W.astype(f32), ((0, n_hid_p - n_hid), (0, n_vis_p - n_vis)))
    W_bf = W_p.astype(jnp.bfloat16)
    Wt_bf = W_p.T.astype(jnp.bfloat16)            # transpose hoisted out of the kernel
    hb_row = jnp.pad(h_bias.astype(f32), (0, n_hid_p - n_hid)).reshape(1, n_hid_p)
    vb_row = jnp.pad(v_bias.astype(f32), (0, n_vis_p - n_vis)).reshape(1, n_vis_p)

    def make_v(tb):
        b_p = _round_up(B, tb)
        return b_p, jnp.pad(initial_v.astype(f32),
                            ((0, b_p - B), (0, n_vis_p - n_vis)))

    def cost(b_p, extra_bytes=0):
        flops = 2 * (2 * k) * b_p * n_hid_p * n_vis_p        # 2k live matmuls
        transcend = b_p * k * (n_hid_p + n_vis_p)            # sigmoids
        byts = (b_p * n_vis_p * 8                            # v in (f32) + out (f32)
                + W_bf.size * 2 + Wt_bf.size * 2
                + (n_hid_p + n_vis_p) * 4 + extra_bytes)
        return pl.CostEstimate(flops=int(flops), transcendentals=int(transcend),
                               bytes_accessed=int(byts))

    def run_prng():
        tb = min(_round_up(B, 8), 256)                # 256 fills the MXU
        b_p, v_p = make_v(tb)
        seed_arr = jnp.array([seed], dtype=jnp.int32)
        out = pl.pallas_call(
            functools.partial(_rbm_kernel_prng, k=k),
            out_shape=jax.ShapeDtypeStruct((b_p, n_vis_p), f32),
            grid_spec=pltpu.PrefetchScalarGridSpec(
                num_scalar_prefetch=1,
                grid=(b_p // tb,),
                in_specs=[
                    pl.BlockSpec((tb, n_vis_p), lambda i, *_: (i, 0)),       # v tile
                    pl.BlockSpec((n_hid_p, n_vis_p), lambda i, *_: (0, 0)),  # W (resident)
                    pl.BlockSpec((n_vis_p, n_hid_p), lambda i, *_: (0, 0)),  # W^T (resident)
                    pl.BlockSpec((1, n_hid_p), lambda i, *_: (0, 0)),        # h_bias
                    pl.BlockSpec((1, n_vis_p), lambda i, *_: (0, 0)),        # v_bias
                ],
                out_specs=pl.BlockSpec((tb, n_vis_p), lambda i, *_: (i, 0)),
            ),
            compiler_params=pltpu.CompilerParams(
                dimension_semantics=("parallel",)),
            cost_estimate=cost(b_p),
        )(seed_arr, v_p, W_bf, Wt_bf, hb_row, vb_row)
        return out[:B, :n_vis]

    def run_host_uniform():
        tb = min(_round_up(B, 8), 128)                # smaller tile: uniforms stream too
        b_p, v_p = make_v(tb)
        kh, kv = jax.random.split(jax.random.PRNGKey(seed))
        u_h = jax.random.uniform(kh, (k, b_p, n_hid_p), dtype=f32)
        u_v = jax.random.uniform(kv, (k, b_p, n_vis_p), dtype=f32)
        out = pl.pallas_call(
            functools.partial(_rbm_kernel_hostu, k=k),
            out_shape=jax.ShapeDtypeStruct((b_p, n_vis_p), f32),
            grid=(b_p // tb,),
            in_specs=[
                pl.BlockSpec((tb, n_vis_p), lambda i: (i, 0)),
                pl.BlockSpec((n_hid_p, n_vis_p), lambda i: (0, 0)),
                pl.BlockSpec((n_vis_p, n_hid_p), lambda i: (0, 0)),
                pl.BlockSpec((1, n_hid_p), lambda i: (0, 0)),
                pl.BlockSpec((1, n_vis_p), lambda i: (0, 0)),
                pl.BlockSpec((k, tb, n_hid_p), lambda i: (0, i, 0)),
                pl.BlockSpec((k, tb, n_vis_p), lambda i: (0, i, 0)),
            ],
            out_specs=pl.BlockSpec((tb, n_vis_p), lambda i: (i, 0)),
            compiler_params=pltpu.CompilerParams(
                dimension_semantics=("parallel",)),
            cost_estimate=cost(b_p, extra_bytes=(u_h.size + u_v.size) * 4),
        )(v_p, W_bf, Wt_bf, hb_row, vb_row, u_h, u_v)
        return out[:B, :n_vis]

    try:
        v_k = jax.block_until_ready(run_prng())
    except Exception:
        # TODO(synk): drop this fallback once the stateful TPU PRNG
        # (pltpu.prng_seed / prng_random_bits) is guaranteed to lower in the
        # execution environment; on real TPU hardware the PRNG path is used.
        v_k = jax.block_until_ready(run_host_uniform())

    return initial_v, v_k


if __name__ == "__main__":
    # Small shapes consistent with the module (n_vis=784, n_hid=500 scaled down).
    B, N_VIS, N_HID, K = 8, 256, 128, 5

    key = jax.random.PRNGKey(0)
    k_w, k_v = jax.random.split(key)

    # Deterministic parameter init mirroring __init__: W ~ 0.01*randn, biases = 0.
    W = 0.01 * jax.random.normal(k_w, (N_HID, N_VIS), dtype=jnp.float32)
    v_bias = jnp.zeros((N_VIS,), dtype=jnp.float32)
    h_bias = jnp.zeros((N_HID,), dtype=jnp.float32)

    # Binary-ish visible input (like binarized MNIST pixels).
    initial_v = (jax.random.uniform(k_v, (B, N_VIS)) < 0.5).astype(jnp.float32)

    v0_out, v_k = rbm_forward(initial_v, W, v_bias, h_bias, k=K, seed=1234)
    jax.block_until_ready(v_k)

    assert v0_out.shape == (B, N_VIS)
    assert v_k.shape == (B, N_VIS)
    # Samples must be exactly {0, 1}.
    assert bool(jnp.all((v_k == 0.0) | (v_k == 1.0)))

    print("KERNEL_OK")
</pallas_src>

<mosaic_0001>
module attributes {stable_mosaic.version = 11 : i64} {
  func.func @_rbm_kernel_prng(%arg0: i32, %arg1: memref<1xi32, #tpu.memory_space<smem>>, %arg2: memref<8x256xf32, #tpu.memory_space<vmem>>, %arg3: memref<128x256xbf16, #tpu.memory_space<vmem>>, %arg4: memref<256x128xbf16, #tpu.memory_space<vmem>>, %arg5: memref<1x128xf32, #tpu.memory_space<vmem>>, %arg6: memref<1x256xf32, #tpu.memory_space<vmem>>, %arg7: memref<8x256xf32, #tpu.memory_space<vmem>>) attributes {dimension_semantics = [#tpu.dimension_semantics<parallel>], iteration_bounds = array<i64: 1>, scalar_prefetch = 1 : i64, scratch_operands = 0 : i64, tpu.core_type = #tpu.core_type<tc>, window_params = [{transform_indices = @transform_0, window_bounds = array<i64: 8, 256>}, {pipeline_mode = #tpu.pipeline_mode<synchronous>, transform_indices = @transform_1, window_bounds = array<i64: 128, 256>}, {pipeline_mode = #tpu.pipeline_mode<synchronous>, transform_indices = @transform_2, window_bounds = array<i64: 256, 128>}, {pipeline_mode = #tpu.pipeline_mode<synchronous>, transform_indices = @transform_3, window_bounds = array<i64: 1, 128>}, {pipeline_mode = #tpu.pipeline_mode<synchronous>, transform_indices = @transform_4, window_bounds = array<i64: 1, 256>}, {transform_indices = @transform_5, window_bounds = array<i64: 8, 256>}]} {
    %c0 = arith.constant 0 : index
    %0 = memref.load %arg1[%c0] : memref<1xi32, #tpu.memory_space<smem>>
    "tpu.prng_set_seed_32"(%0, %arg0) : (i32, i32) -> ()
    %c0_0 = arith.constant 0 : index
    %c0_1 = arith.constant 0 : index
    %1 = vector.load %arg3[%c0_0, %c0_1] : memref<128x256xbf16, #tpu.memory_space<vmem>>, vector<128x256xbf16>
    %c0_2 = arith.constant 0 : index
    %c0_3 = arith.constant 0 : index
    %2 = vector.load %arg4[%c0_2, %c0_3] : memref<256x128xbf16, #tpu.memory_space<vmem>>, vector<256x128xbf16>
    %c0_4 = arith.constant 0 : index
    %c0_5 = arith.constant 0 : index
    %3 = vector.load %arg5[%c0_4, %c0_5] : memref<1x128xf32, #tpu.memory_space<vmem>>, vector<1x128xf32>
    %4 = vector.shape_cast %3 : vector<1x128xf32> to vector<1x128xf32>
    %5 = vector.broadcast %4 : vector<1x128xf32> to vector<8x128xf32>
    %c0_6 = arith.constant 0 : index
    %c0_7 = arith.constant 0 : index
    %6 = vector.load %arg6[%c0_6, %c0_7] : memref<1x256xf32, #tpu.memory_space<vmem>>, vector<1x256xf32>
    %7 = vector.shape_cast %6 : vector<1x256xf32> to vector<1x256xf32>
    %8 = vector.broadcast %7 : vector<1x256xf32> to vector<8x256xf32>
    %c0_8 = arith.constant 0 : index
    %c0_9 = arith.constant 0 : index
    %9 = vector.load %arg2[%c0_8, %c0_9] : memref<8x256xf32, #tpu.memory_space<vmem>>, vector<8x256xf32>
    %10 = arith.truncf %9 : vector<8x256xf32> to vector<8x256xbf16>
    %cst = arith.constant dense<0.000000e+00> : vector<8x128xf32>
    %11 = tpu.matmul %10, %2, %cst {dimension_numbers = #tpu.dot_dimension_numbers<[1], [0], [0], [1], [0, 0, 1, 1], [], []>} : vector<8x256xbf16>, vector<256x128xbf16>, vector<8x128xf32> -> vector<8x128xf32>
    %12 = arith.addf %11, %5 : vector<8x128xf32>
    %13 = arith.negf %12 : vector<8x128xf32>
    %14 = math.exp %13 : vector<8x128xf32>
    %cst_10 = arith.constant 1.000000e+00 : f32
    %15 = vector.broadcast %cst_10 : f32 to vector<8x128xf32>
    %16 = arith.addf %15, %14 : vector<8x128xf32>
    %17 = arith.divf %15, %16 : vector<8x128xf32>
    %18 = "tpu.prng_random_bits"() : () -> vector<8x128xi32>
    %c8388607_i32 = arith.constant 8388607 : i32
    %19 = vector.broadcast %c8388607_i32 : i32 to vector<8x128xi32>
    %20 = arith.andi %18, %19 : vector<8x128xi32>
    %c1065353216_i32 = arith.constant 1065353216 : i32
    %21 = vector.broadcast %c1065353216_i32 : i32 to vector<8x128xi32>
    %22 = arith.ori %20, %21 : vector<8x128xi32>
    %23 = tpu.bitcast %22 : vector<8x128xi32> -> vector<8x128xf32>
    %cst_11 = arith.constant 1.000000e+00 : f32
    %24 = vector.broadcast %cst_11 : f32 to vector<8x128xf32>
    %25 = arith.subf %23, %24 : vector<8x128xf32>
    %26 = arith.cmpf ogt, %17, %25 : vector<8x128xf32>
    %27 = arith.extui %26 : vector<8x128xi1> to vector<8x128xi32>
    %28 = arith.sitofp %27 : vector<8x128xi32> to vector<8x128xf32>
    %29 = arith.truncf %28 : vector<8x128xf32> to vector<8x128xbf16>
    %cst_12 = arith.constant dense<0.000000e+00> : vector<8x256xf32>
    %30 = tpu.matmul %29, %1, %cst_12 {dimension_numbers = #tpu.dot_dimension_numbers<[1], [0], [0], [1], [0, 0, 1, 1], [], []>} : vector<8x128xbf16>, vector<128x256xbf16>, vector<8x256xf32> -> vector<8x256xf32>
    %31 = arith.addf %30, %8 : vector<8x256xf32>
    %32 = arith.negf %31 : vector<8x256xf32>
    %33 = math.exp %32 : vector<8x256xf32>
    %cst_13 = arith.constant 1.000000e+00 : f32
    %34 = vector.broadcast %cst_13 : f32 to vector<8x256xf32>
    %35 = arith.addf %34, %33 : vector<8x256xf32>
    %36 = arith.divf %34, %35 : vector<8x256xf32>
    %37 = "tpu.prng_random_bits"() : () -> vector<8x256xi32>
    %c8388607_i32_14 = arith.constant 8388607 : i32
    %38 = vector.broadcast %c8388607_i32_14 : i32 to vector<8x256xi32>
    %39 = arith.andi %37, %38 : vector<8x256xi32>
    %c1065353216_i32_15 = arith.constant 1065353216 : i32
    %40 = vector.broadcast %c1065353216_i32_15 : i32 to vector<8x256xi32>
    %41 = arith.ori %39, %40 : vector<8x256xi32>
    %42 = tpu.bitcast %41 : vector<8x256xi32> -> vector<8x256xf32>
    %cst_16 = arith.constant 1.000000e+00 : f32
    %43 = vector.broadcast %cst_16 : f32 to vector<8x256xf32>
    %44 = arith.subf %42, %43 : vector<8x256xf32>
    %45 = arith.cmpf ogt, %36, %44 : vector<8x256xf32>
    %46 = arith.extui %45 : vector<8x256xi1> to vector<8x256xi32>
    %47 = arith.sitofp %46 : vector<8x256xi32> to vector<8x256xf32>
    %48 = arith.truncf %47 : vector<8x256xf32> to vector<8x256xbf16>
    %cst_17 = arith.constant dense<0.000000e+00> : vector<8x128xf32>
    %49 = tpu.matmul %48, %2, %cst_17 {dimension_numbers = #tpu.dot_dimension_numbers<[1], [0], [0], [1], [0, 0, 1, 1], [], []>} : vector<8x256xbf16>, vector<256x128xbf16>, vector<8x128xf32> -> vector<8x128xf32>
    %50 = arith.addf %49, %5 : vector<8x128xf32>
    %51 = arith.negf %50 : vector<8x128xf32>
    %52 = math.exp %51 : vector<8x128xf32>
    %cst_18 = arith.constant 1.000000e+00 : f32
    %53 = vector.broadcast %cst_18 : f32 to vector<8x128xf32>
    %54 = arith.addf %53, %52 : vector<8x128xf32>
    %55 = arith.divf %53, %54 : vector<8x128xf32>
    %56 = "tpu.prng_random_bits"() : () -> vector<8x128xi32>
    %c8388607_i32_19 = arith.constant 8388607 : i32
    %57 = vector.broadcast %c8388607_i32_19 : i32 to vector<8x128xi32>
    %58 = arith.andi %56, %57 : vector<8x128xi32>
    %c1065353216_i32_20 = arith.constant 1065353216 : i32
    %59 = vector.broadcast %c1065353216_i32_20 : i32 to vector<8x128xi32>
    %60 = arith.ori %58, %59 : vector<8x128xi32>
    %61 = tpu.bitcast %60 : vector<8x128xi32> -> vector<8x128xf32>
    %cst_21 = arith.constant 1.000000e+00 : f32
    %62 = vector.broadcast %cst_21 : f32 to vector<8x128xf32>
    %63 = arith.subf %61, %62 : vector<8x128xf32>
    %64 = arith.cmpf ogt, %55, %63 : vector<8x128xf32>
    %65 = arith.extui %64 : vector<8x128xi1> to vector<8x128xi32>
    %66 = arith.sitofp %65 : vector<8x128xi32> to vector<8x128xf32>
    %67 = arith.truncf %66 : vector<8x128xf32> to vector<8x128xbf16>
    %cst_22 = arith.constant dense<0.000000e+00> : vector<8x256xf32>
    %68 = tpu.matmul %67, %1, %cst_22 {dimension_numbers = #tpu.dot_dimension_numbers<[1], [0], [0], [1], [0, 0, 1, 1], [], []>} : vector<8x128xbf16>, vector<128x256xbf16>, vector<8x256xf32> -> vector<8x256xf32>
    %69 = arith.addf %68, %8 : vector<8x256xf32>
    %70 = arith.negf %69 : vector<8x256xf32>
    %71 = math.exp %70 : vector<8x256xf32>
    %cst_23 = arith.constant 1.000000e+00 : f32
    %72 = vector.broadcast %cst_23 : f32 to vector<8x256xf32>
    %73 = arith.addf %72, %71 : vector<8x256xf32>
    %74 = arith.divf %72, %73 : vector<8x256xf32>
    %75 = "tpu.prng_random_bits"() : () -> vector<8x256xi32>
    %c8388607_i32_24 = arith.constant 8388607 : i32
    %76 = vector.broadcast %c8388607_i32_24 : i32 to vector<8x256xi32>
    %77 = arith.andi %75, %76 : vector<8x256xi32>
    %c1065353216_i32_25 = arith.constant 1065353216 : i32
    %78 = vector.broadcast %c1065353216_i32_25 : i32 to vector<8x256xi32>
    %79 = arith.ori %77, %78 : vector<8x256xi32>
    %80 = tpu.bitcast %79 : vector<8x256xi32> -> vector<8x256xf32>
    %cst_26 = arith.constant 1.000000e+00 : f32
    %81 = vector.broadcast %cst_26 : f32 to vector<8x256xf32>
    %82 = arith.subf %80, %81 : vector<8x256xf32>
    %83 = arith.cmpf ogt, %74, %82 : vector<8x256xf32>
    %84 = arith.extui %83 : vector<8x256xi1> to vector<8x256xi32>
    %85 = arith.sitofp %84 : vector<8x256xi32> to vector<8x256xf32>
    %86 = arith.truncf %85 : vector<8x256xf32> to vector<8x256xbf16>
    %cst_27 = arith.constant dense<0.000000e+00> : vector<8x128xf32>
    %87 = tpu.matmul %86, %2, %cst_27 {dimension_numbers = #tpu.dot_dimension_numbers<[1], [0], [0], [1], [0, 0, 1, 1], [], []>} : vector<8x256xbf16>, vector<256x128xbf16>, vector<8x128xf32> -> vector<8x128xf32>
    %88 = arith.addf %87, %5 : vector<8x128xf32>
    %89 = arith.negf %88 : vector<8x128xf32>
    %90 = math.exp %89 : vector<8x128xf32>
    %cst_28 = arith.constant 1.000000e+00 : f32
    %91 = vector.broadcast %cst_28 : f32 to vector<8x128xf32>
    %92 = arith.addf %91, %90 : vector<8x128xf32>
    %93 = arith.divf %91, %92 : vector<8x128xf32>
    %94 = "tpu.prng_random_bits"() : () -> vector<8x128xi32>
    %c8388607_i32_29 = arith.constant 8388607 : i32
    %95 = vector.broadcast %c8388607_i32_29 : i32 to vector<8x128xi32>
    %96 = arith.andi %94, %95 : vector<8x128xi32>
    %c1065353216_i32_30 = arith.constant 1065353216 : i32
    %97 = vector.broadcast %c1065353216_i32_30 : i32 to vector<8x128xi32>
    %98 = arith.ori %96, %97 : vector<8x128xi32>
    %99 = tpu.bitcast %98 : vector<8x128xi32> -> vector<8x128xf32>
    %cst_31 = arith.constant 1.000000e+00 : f32
    %100 = vector.broadcast %cst_31 : f32 to vector<8x128xf32>
    %101 = arith.subf %99, %100 : vector<8x128xf32>
    %102 = arith.cmpf ogt, %93, %101 : vector<8x128xf32>
    %103 = arith.extui %102 : vector<8x128xi1> to vector<8x128xi32>
    %104 = arith.sitofp %103 : vector<8x128xi32> to vector<8x128xf32>
    %105 = arith.truncf %104 : vector<8x128xf32> to vector<8x128xbf16>
    %cst_32 = arith.constant dense<0.000000e+00> : vector<8x256xf32>
    %106 = tpu.matmul %105, %1, %cst_32 {dimension_numbers = #tpu.dot_dimension_numbers<[1], [0], [0], [1], [0, 0, 1, 1], [], []>} : vector<8x128xbf16>, vector<128x256xbf16>, vector<8x256xf32> -> vector<8x256xf32>
    %107 = arith.addf %106, %8 : vector<8x256xf32>
    %108 = arith.negf %107 : vector<8x256xf32>
    %109 = math.exp %108 : vector<8x256xf32>
    %cst_33 = arith.constant 1.000000e+00 : f32
    %110 = vector.broadcast %cst_33 : f32 to vector<8x256xf32>
    %111 = arith.addf %110, %109 : vector<8x256xf32>
    %112 = arith.divf %110, %111 : vector<8x256xf32>
    %113 = "tpu.prng_random_bits"() : () -> vector<8x256xi32>
    %c8388607_i32_34 = arith.constant 8388607 : i32
    %114 = vector.broadcast %c8388607_i32_34 : i32 to vector<8x256xi32>
    %115 = arith.andi %113, %114 : vector<8x256xi32>
    %c1065353216_i32_35 = arith.constant 1065353216 : i32
    %116 = vector.broadcast %c1065353216_i32_35 : i32 to vector<8x256xi32>
    %117 = arith.ori %115, %116 : vector<8x256xi32>
    %118 = tpu.bitcast %117 : vector<8x256xi32> -> vector<8x256xf32>
    %cst_36 = arith.constant 1.000000e+00 : f32
    %119 = vector.broadcast %cst_36 : f32 to vector<8x256xf32>
    %120 = arith.subf %118, %119 : vector<8x256xf32>
    %121 = arith.cmpf ogt, %112, %120 : vector<8x256xf32>
    %122 = arith.extui %121 : vector<8x256xi1> to vector<8x256xi32>
    %123 = arith.sitofp %122 : vector<8x256xi32> to vector<8x256xf32>
    %124 = arith.truncf %123 : vector<8x256xf32> to vector<8x256xbf16>
    %cst_37 = arith.constant dense<0.000000e+00> : vector<8x128xf32>
    %125 = tpu.matmul %124, %2, %cst_37 {dimension_numbers = #tpu.dot_dimension_numbers<[1], [0], [0], [1], [0, 0, 1, 1], [], []>} : vector<8x256xbf16>, vector<256x128xbf16>, vector<8x128xf32> -> vector<8x128xf32>
    %126 = arith.addf %125, %5 : vector<8x128xf32>
    %127 = arith.negf %126 : vector<8x128xf32>
    %128 = math.exp %127 : vector<8x128xf32>
    %cst_38 = arith.constant 1.000000e+00 : f32
    %129 = vector.broadcast %cst_38 : f32 to vector<8x128xf32>
    %130 = arith.addf %129, %128 : vector<8x128xf32>
    %131 = arith.divf %129, %130 : vector<8x128xf32>
    %132 = "tpu.prng_random_bits"() : () -> vector<8x128xi32>
    %c8388607_i32_39 = arith.constant 8388607 : i32
    %133 = vector.broadcast %c8388607_i32_39 : i32 to vector<8x128xi32>
    %134 = arith.andi %132, %133 : vector<8x128xi32>
    %c1065353216_i32_40 = arith.constant 1065353216 : i32
    %135 = vector.broadcast %c1065353216_i32_40 : i32 to vector<8x128xi32>
    %136 = arith.ori %134, %135 : vector<8x128xi32>
    %137 = tpu.bitcast %136 : vector<8x128xi32> -> vector<8x128xf32>
    %cst_41 = arith.constant 1.000000e+00 : f32
    %138 = vector.broadcast %cst_41 : f32 to vector<8x128xf32>
    %139 = arith.subf %137, %138 : vector<8x128xf32>
    %140 = arith.cmpf ogt, %131, %139 : vector<8x128xf32>
    %141 = arith.extui %140 : vector<8x128xi1> to vector<8x128xi32>
    %142 = arith.sitofp %141 : vector<8x128xi32> to vector<8x128xf32>
    %143 = arith.truncf %142 : vector<8x128xf32> to vector<8x128xbf16>
    %cst_42 = arith.constant dense<0.000000e+00> : vector<8x256xf32>
    %144 = tpu.matmul %143, %1, %cst_42 {dimension_numbers = #tpu.dot_dimension_numbers<[1], [0], [0], [1], [0, 0, 1, 1], [], []>} : vector<8x128xbf16>, vector<128x256xbf16>, vector<8x256xf32> -> vector<8x256xf32>
    %145 = arith.addf %144, %8 : vector<8x256xf32>
    %146 = arith.negf %145 : vector<8x256xf32>
    %147 = math.exp %146 : vector<8x256xf32>
    %cst_43 = arith.constant 1.000000e+00 : f32
    %148 = vector.broadcast %cst_43 : f32 to vector<8x256xf32>
    %149 = arith.addf %148, %147 : vector<8x256xf32>
    %150 = arith.divf %148, %149 : vector<8x256xf32>
    %151 = "tpu.prng_random_bits"() : () -> vector<8x256xi32>
    %c8388607_i32_44 = arith.constant 8388607 : i32
    %152 = vector.broadcast %c8388607_i32_44 : i32 to vector<8x256xi32>
    %153 = arith.andi %151, %152 : vector<8x256xi32>
    %c1065353216_i32_45 = arith.constant 1065353216 : i32
    %154 = vector.broadcast %c1065353216_i32_45 : i32 to vector<8x256xi32>
    %155 = arith.ori %153, %154 : vector<8x256xi32>
    %156 = tpu.bitcast %155 : vector<8x256xi32> -> vector<8x256xf32>
    %cst_46 = arith.constant 1.000000e+00 : f32
    %157 = vector.broadcast %cst_46 : f32 to vector<8x256xf32>
    %158 = arith.subf %156, %157 : vector<8x256xf32>
    %159 = arith.cmpf ogt, %150, %158 : vector<8x256xf32>
    %160 = arith.extui %159 : vector<8x256xi1> to vector<8x256xi32>
    %161 = arith.sitofp %160 : vector<8x256xi32> to vector<8x256xf32>
    %162 = arith.truncf %161 : vector<8x256xf32> to vector<8x256xbf16>
    %cst_47 = arith.constant dense<0.000000e+00> : vector<8x128xf32>
    %163 = tpu.matmul %162, %2, %cst_47 {dimension_numbers = #tpu.dot_dimension_numbers<[1], [0], [0], [1], [0, 0, 1, 1], [], []>} : vector<8x256xbf16>, vector<256x128xbf16>, vector<8x128xf32> -> vector<8x128xf32>
    %164 = arith.addf %163, %5 : vector<8x128xf32>
    %165 = arith.negf %164 : vector<8x128xf32>
    %166 = math.exp %165 : vector<8x128xf32>
    %cst_48 = arith.constant 1.000000e+00 : f32
    %167 = vector.broadcast %cst_48 : f32 to vector<8x128xf32>
    %168 = arith.addf %167, %166 : vector<8x128xf32>
    %169 = arith.divf %167, %168 : vector<8x128xf32>
    %170 = "tpu.prng_random_bits"() : () -> vector<8x128xi32>
    %c8388607_i32_49 = arith.constant 8388607 : i32
    %171 = vector.broadcast %c8388607_i32_49 : i32 to vector<8x128xi32>
    %172 = arith.andi %170, %171 : vector<8x128xi32>
    %c1065353216_i32_50 = arith.constant 1065353216 : i32
    %173 = vector.broadcast %c1065353216_i32_50 : i32 to vector<8x128xi32>
    %174 = arith.ori %172, %173 : vector<8x128xi32>
    %175 = tpu.bitcast %174 : vector<8x128xi32> -> vector<8x128xf32>
    %cst_51 = arith.constant 1.000000e+00 : f32
    %176 = vector.broadcast %cst_51 : f32 to vector<8x128xf32>
    %177 = arith.subf %175, %176 : vector<8x128xf32>
    %178 = arith.cmpf ogt, %169, %177 : vector<8x128xf32>
    %179 = arith.extui %178 : vector<8x128xi1> to vector<8x128xi32>
    %180 = arith.sitofp %179 : vector<8x128xi32> to vector<8x128xf32>
    %181 = arith.truncf %180 : vector<8x128xf32> to vector<8x128xbf16>
    %cst_52 = arith.constant dense<0.000000e+00> : vector<8x256xf32>
    %182 = tpu.matmul %181, %1, %cst_52 {dimension_numbers = #tpu.dot_dimension_numbers<[1], [0], [0], [1], [0, 0, 1, 1], [], []>} : vector<8x128xbf16>, vector<128x256xbf16>, vector<8x256xf32> -> vector<8x256xf32>
    %183 = arith.addf %182, %8 : vector<8x256xf32>
    %184 = arith.negf %183 : vector<8x256xf32>
    %185 = math.exp %184 : vector<8x256xf32>
    %cst_53 = arith.constant 1.000000e+00 : f32
    %186 = vector.broadcast %cst_53 : f32 to vector<8x256xf32>
    %187 = arith.addf %186, %185 : vector<8x256xf32>
    %188 = arith.divf %186, %187 : vector<8x256xf32>
    %189 = "tpu.prng_random_bits"() : () -> vector<8x256xi32>
    %c8388607_i32_54 = arith.constant 8388607 : i32
    %190 = vector.broadcast %c8388607_i32_54 : i32 to vector<8x256xi32>
    %191 = arith.andi %189, %190 : vector<8x256xi32>
    %c1065353216_i32_55 = arith.constant 1065353216 : i32
    %192 = vector.broadcast %c1065353216_i32_55 : i32 to vector<8x256xi32>
    %193 = arith.ori %191, %192 : vector<8x256xi32>
    %194 = tpu.bitcast %193 : vector<8x256xi32> -> vector<8x256xf32>
    %cst_56 = arith.constant 1.000000e+00 : f32
    %195 = vector.broadcast %cst_56 : f32 to vector<8x256xf32>
    %196 = arith.subf %194, %195 : vector<8x256xf32>
    %197 = arith.cmpf ogt, %188, %196 : vector<8x256xf32>
    %198 = arith.extui %197 : vector<8x256xi1> to vector<8x256xi32>
    %199 = arith.sitofp %198 : vector<8x256xi32> to vector<8x256xf32>
    %200 = arith.truncf %199 : vector<8x256xf32> to vector<8x256xbf16>
    %201 = arith.extf %200 : vector<8x256xbf16> to vector<8x256xf32>
    %c0_57 = arith.constant 0 : index
    %c0_58 = arith.constant 0 : index
    %202 = vector.load %arg7[%c0_57, %c0_58] : memref<8x256xf32, #tpu.memory_space<vmem>>, vector<8x256xf32>
    tpu.vector_store %arg7[%c0_57, %c0_58], %201 {strides = array<i32>} : memref<8x256xf32, #tpu.memory_space<vmem>>, vector<8x256xf32>,
    return
  }
  func.func @transform_0(%arg0: i32, %arg1: memref<1xi32, #tpu.memory_space<smem>>) -> (i32, i32) {
    %c0_i32 = arith.constant 0 : i32
    %c0_i32_0 = arith.constant 0 : i32
    return %arg0, %c0_i32 : i32, i32
  }
  func.func @transform_1(%arg0: i32, %arg1: memref<1xi32, #tpu.memory_space<smem>>) -> (i32, i32) {
    %c0_i32 = arith.constant 0 : i32
    %c0_i32_0 = arith.constant 0 : i32
    %c0_i32_1 = arith.constant 0 : i32
    return %c0_i32, %c0_i32_0 : i32, i32
  }
  func.func @transform_2(%arg0: i32, %arg1: memref<1xi32, #tpu.memory_space<smem>>) -> (i32, i32) {
    %c0_i32 = arith.constant 0 : i32
    %c0_i32_0 = arith.constant 0 : i32
    %c0_i32_1 = arith.constant 0 : i32
    return %c0_i32, %c0_i32_0 : i32, i32
  }
  func.func @transform_3(%arg0: i32, %arg1: memref<1xi32, #tpu.memory_space<smem>>) -> (i32, i32) {
    %c0_i32 = arith.constant 0 : i32
    %c0_i32_0 = arith.constant 0 : i32
    %c0_i32_1 = arith.constant 0 : i32
    return %c0_i32, %c0_i32_0 : i32, i32
  }
  func.func @transform_4(%arg0: i32, %arg1: memref<1xi32, #tpu.memory_space<smem>>) -> (i32, i32) {
    %c0_i32 = arith.constant 0 : i32
    %c0_i32_0 = arith.constant 0 : i32
    %c0_i32_1 = arith.constant 0 : i32
    return %c0_i32, %c0_i32_0 : i32, i32
  }
  func.func @transform_5(%arg0: i32, %arg1: memref<1xi32, #tpu.memory_space<smem>>) -> (i32, i32) {
    %c0_i32 = arith.constant 0 : i32
    %c0_i32_0 = arith.constant 0 : i32
    return %arg0, %c0_i32 : i32, i32
  }
}

module attributes {stable_mosaic.version = 11 : i64} {
  func.func @_rbm_kernel_hostu(%arg0: i32, %arg1: memref<8x256xf32, #tpu.memory_space<vmem>>, %arg2: memref<128x256xbf16, #tpu.memory_space<vmem>>, %arg3: memref<256x128xbf16, #tpu.memory_space<vmem>>, %arg4: memref<1x128xf32, #tpu.memory_space<vmem>>, %arg5: memref<1x256xf32, #tpu.memory_space<vmem>>, %arg6: memref<5x8x128xf32, #tpu.memory_space<vmem>>, %arg7: memref<5x8x256xf32, #tpu.memory_space<vmem>>, %arg8: memref<8x256xf32, #tpu.memory_space<vmem>>) attributes {dimension_semantics = [#tpu.dimension_semantics<parallel>], iteration_bounds = array<i64: 1>, scalar_prefetch = 0 : i64, scratch_operands = 0 : i64, tpu.core_type = #tpu.core_type<tc>, window_params = [{transform_indices = @transform_0, window_bounds = array<i64: 8, 256>}, {pipeline_mode = #tpu.pipeline_mode<synchronous>, transform_indices = @transform_1, window_bounds = array<i64: 128, 256>}, {pipeline_mode = #tpu.pipeline_mode<synchronous>, transform_indices = @transform_2, window_bounds = array<i64: 256, 128>}, {pipeline_mode = #tpu.pipeline_mode<synchronous>, transform_indices = @transform_3, window_bounds = array<i64: 1, 128>}, {pipeline_mode = #tpu.pipeline_mode<synchronous>, transform_indices = @transform_4, window_bounds = array<i64: 1, 256>}, {transform_indices = @transform_5, window_bounds = array<i64: 5, 8, 128>}, {transform_indices = @transform_6, window_bounds = array<i64: 5, 8, 256>}, {transform_indices = @transform_7, window_bounds = array<i64: 8, 256>}]} {
    %c0 = arith.constant 0 : index
    %c0_0 = arith.constant 0 : index
    %0 = vector.load %arg2[%c0, %c0_0] : memref<128x256xbf16, #tpu.memory_space<vmem>>, vector<128x256xbf16>
    %c0_1 = arith.constant 0 : index
    %c0_2 = arith.constant 0 : index
    %1 = vector.load %arg3[%c0_1, %c0_2] : memref<256x128xbf16, #tpu.memory_space<vmem>>, vector<256x128xbf16>
    %c0_3 = arith.constant 0 : index
    %c0_4 = arith.constant 0 : index
    %2 = vector.load %arg4[%c0_3, %c0_4] : memref<1x128xf32, #tpu.memory_space<vmem>>, vector<1x128xf32>
    %3 = vector.shape_cast %2 : vector<1x128xf32> to vector<1x128xf32>
    %4 = vector.broadcast %3 : vector<1x128xf32> to vector<8x128xf32>
    %c0_5 = arith.constant 0 : index
    %c0_6 = arith.constant 0 : index
    %5 = vector.load %arg5[%c0_5, %c0_6] : memref<1x256xf32, #tpu.memory_space<vmem>>, vector<1x256xf32>
    %6 = vector.shape_cast %5 : vector<1x256xf32> to vector<1x256xf32>
    %7 = vector.broadcast %6 : vector<1x256xf32> to vector<8x256xf32>
    %c0_7 = arith.constant 0 : index
    %c0_8 = arith.constant 0 : index
    %8 = vector.load %arg1[%c0_7, %c0_8] : memref<8x256xf32, #tpu.memory_space<vmem>>, vector<8x256xf32>
    %9 = arith.truncf %8 : vector<8x256xf32> to vector<8x256xbf16>
    %cst = arith.constant dense<0.000000e+00> : vector<8x128xf32>
    %10 = tpu.matmul %9, %1, %cst {dimension_numbers = #tpu.dot_dimension_numbers<[1], [0], [0], [1], [0, 0, 1, 1], [], []>} : vector<8x256xbf16>, vector<256x128xbf16>, vector<8x128xf32> -> vector<8x128xf32>
    %11 = arith.addf %10, %4 : vector<8x128xf32>
    %12 = arith.negf %11 : vector<8x128xf32>
    %13 = math.exp %12 : vector<8x128xf32>
    %cst_9 = arith.constant 1.000000e+00 : f32
    %14 = vector.broadcast %cst_9 : f32 to vector<8x128xf32>
    %15 = arith.addf %14, %13 : vector<8x128xf32>
    %16 = arith.divf %14, %15 : vector<8x128xf32>
    %c0_10 = arith.constant 0 : index
    %c0_11 = arith.constant 0 : index
    %c0_12 = arith.constant 0 : index
    %17 = vector.load %arg6[%c0_10, %c0_11, %c0_12] : memref<5x8x128xf32, #tpu.memory_space<vmem>>, vector<1x8x128xf32>
    %18 = vector.shape_cast %17 : vector<1x8x128xf32> to vector<8x128xf32>
    %19 = arith.cmpf ogt, %16, %18 : vector<8x128xf32>
    %20 = arith.extui %19 : vector<8x128xi1> to vector<8x128xi32>
    %21 = arith.sitofp %20 : vector<8x128xi32> to vector<8x128xf32>
    %22 = arith.truncf %21 : vector<8x128xf32> to vector<8x128xbf16>
    %cst_13 = arith.constant dense<0.000000e+00> : vector<8x256xf32>
    %23 = tpu.matmul %22, %0, %cst_13 {dimension_numbers = #tpu.dot_dimension_numbers<[1], [0], [0], [1], [0, 0, 1, 1], [], []>} : vector<8x128xbf16>, vector<128x256xbf16>, vector<8x256xf32> -> vector<8x256xf32>
    %24 = arith.addf %23, %7 : vector<8x256xf32>
    %25 = arith.negf %24 : vector<8x256xf32>
    %26 = math.exp %25 : vector<8x256xf32>
    %cst_14 = arith.constant 1.000000e+00 : f32
    %27 = vector.broadcast %cst_14 : f32 to vector<8x256xf32>
    %28 = arith.addf %27, %26 : vector<8x256xf32>
    %29 = arith.divf %27, %28 : vector<8x256xf32>
    %c0_15 = arith.constant 0 : index
    %c0_16 = arith.constant 0 : index
    %c0_17 = arith.constant 0 : index
    %30 = vector.load %arg7[%c0_15, %c0_16, %c0_17] : memref<5x8x256xf32, #tpu.memory_space<vmem>>, vector<1x8x256xf32>
    %31 = vector.shape_cast %30 : vector<1x8x256xf32> to vector<8x256xf32>
    %32 = arith.cmpf ogt, %29, %31 : vector<8x256xf32>
    %33 = arith.extui %32 : vector<8x256xi1> to vector<8x256xi32>
    %34 = arith.sitofp %33 : vector<8x256xi32> to vector<8x256xf32>
    %35 = arith.truncf %34 : vector<8x256xf32> to vector<8x256xbf16>
    %cst_18 = arith.constant dense<0.000000e+00> : vector<8x128xf32>
    %36 = tpu.matmul %35, %1, %cst_18 {dimension_numbers = #tpu.dot_dimension_numbers<[1], [0], [0], [1], [0, 0, 1, 1], [], []>} : vector<8x256xbf16>, vector<256x128xbf16>, vector<8x128xf32> -> vector<8x128xf32>
    %37 = arith.addf %36, %4 : vector<8x128xf32>
    %38 = arith.negf %37 : vector<8x128xf32>
    %39 = math.exp %38 : vector<8x128xf32>
    %cst_19 = arith.constant 1.000000e+00 : f32
    %40 = vector.broadcast %cst_19 : f32 to vector<8x128xf32>
    %41 = arith.addf %40, %39 : vector<8x128xf32>
    %42 = arith.divf %40, %41 : vector<8x128xf32>
    %c1 = arith.constant 1 : index
    %c0_20 = arith.constant 0 : index
    %c0_21 = arith.constant 0 : index
    %43 = vector.load %arg6[%c1, %c0_20, %c0_21] : memref<5x8x128xf32, #tpu.memory_space<vmem>>, vector<1x8x128xf32>
    %44 = vector.shape_cast %43 : vector<1x8x128xf32> to vector<8x128xf32>
    %45 = arith.cmpf ogt, %42, %44 : vector<8x128xf32>
    %46 = arith.extui %45 : vector<8x128xi1> to vector<8x128xi32>
    %47 = arith.sitofp %46 : vector<8x128xi32> to vector<8x128xf32>
    %48 = arith.truncf %47 : vector<8x128xf32> to vector<8x128xbf16>
    %cst_22 = arith.constant dense<0.000000e+00> : vector<8x256xf32>
    %49 = tpu.matmul %48, %0, %cst_22 {dimension_numbers = #tpu.dot_dimension_numbers<[1], [0], [0], [1], [0, 0, 1, 1], [], []>} : vector<8x128xbf16>, vector<128x256xbf16>, vector<8x256xf32> -> vector<8x256xf32>
    %50 = arith.addf %49, %7 : vector<8x256xf32>
    %51 = arith.negf %50 : vector<8x256xf32>
    %52 = math.exp %51 : vector<8x256xf32>
    %cst_23 = arith.constant 1.000000e+00 : f32
    %53 = vector.broadcast %cst_23 : f32 to vector<8x256xf32>
    %54 = arith.addf %53, %52 : vector<8x256xf32>
    %55 = arith.divf %53, %54 : vector<8x256xf32>
    %c1_24 = arith.constant 1 : index
    %c0_25 = arith.constant 0 : index
    %c0_26 = arith.constant 0 : index
    %56 = vector.load %arg7[%c1_24, %c0_25, %c0_26] : memref<5x8x256xf32, #tpu.memory_space<vmem>>, vector<1x8x256xf32>
    %57 = vector.shape_cast %56 : vector<1x8x256xf32> to vector<8x256xf32>
    %58 = arith.cmpf ogt, %55, %57 : vector<8x256xf32>
    %59 = arith.extui %58 : vector<8x256xi1> to vector<8x256xi32>
    %60 = arith.sitofp %59 : vector<8x256xi32> to vector<8x256xf32>
    %61 = arith.truncf %60 : vector<8x256xf32> to vector<8x256xbf16>
    %cst_27 = arith.constant dense<0.000000e+00> : vector<8x128xf32>
    %62 = tpu.matmul %61, %1, %cst_27 {dimension_numbers = #tpu.dot_dimension_numbers<[1], [0], [0], [1], [0, 0, 1, 1], [], []>} : vector<8x256xbf16>, vector<256x128xbf16>, vector<8x128xf32> -> vector<8x128xf32>
    %63 = arith.addf %62, %4 : vector<8x128xf32>
    %64 = arith.negf %63 : vector<8x128xf32>
    %65 = math.exp %64 : vector<8x128xf32>
    %cst_28 = arith.constant 1.000000e+00 : f32
    %66 = vector.broadcast %cst_28 : f32 to vector<8x128xf32>
    %67 = arith.addf %66, %65 : vector<8x128xf32>
    %68 = arith.divf %66, %67 : vector<8x128xf32>
    %c2 = arith.constant 2 : index
    %c0_29 = arith.constant 0 : index
    %c0_30 = arith.constant 0 : index
    %69 = vector.load %arg6[%c2, %c0_29, %c0_30] : memref<5x8x128xf32, #tpu.memory_space<vmem>>, vector<1x8x128xf32>
    %70 = vector.shape_cast %69 : vector<1x8x128xf32> to vector<8x128xf32>
    %71 = arith.cmpf ogt, %68, %70 : vector<8x128xf32>
    %72 = arith.extui %71 : vector<8x128xi1> to vector<8x128xi32>
    %73 = arith.sitofp %72 : vector<8x128xi32> to vector<8x128xf32>
    %74 = arith.truncf %73 : vector<8x128xf32> to vector<8x128xbf16>
    %cst_31 = arith.constant dense<0.000000e+00> : vector<8x256xf32>
    %75 = tpu.matmul %74, %0, %cst_31 {dimension_numbers = #tpu.dot_dimension_numbers<[1], [0], [0], [1], [0, 0, 1, 1], [], []>} : vector<8x128xbf16>, vector<128x256xbf16>, vector<8x256xf32> -> vector<8x256xf32>
    %76 = arith.addf %75, %7 : vector<8x256xf32>
    %77 = arith.negf %76 : vector<8x256xf32>
    %78 = math.exp %77 : vector<8x256xf32>
    %cst_32 = arith.constant 1.000000e+00 : f32
    %79 = vector.broadcast %cst_32 : f32 to vector<8x256xf32>
    %80 = arith.addf %79, %78 : vector<8x256xf32>
    %81 = arith.divf %79, %80 : vector<8x256xf32>
    %c2_33 = arith.constant 2 : index
    %c0_34 = arith.constant 0 : index
    %c0_35 = arith.constant 0 : index
    %82 = vector.load %arg7[%c2_33, %c0_34, %c0_35] : memref<5x8x256xf32, #tpu.memory_space<vmem>>, vector<1x8x256xf32>
    %83 = vector.shape_cast %82 : vector<1x8x256xf32> to vector<8x256xf32>
    %84 = arith.cmpf ogt, %81, %83 : vector<8x256xf32>
    %85 = arith.extui %84 : vector<8x256xi1> to vector<8x256xi32>
    %86 = arith.sitofp %85 : vector<8x256xi32> to vector<8x256xf32>
    %87 = arith.truncf %86 : vector<8x256xf32> to vector<8x256xbf16>
    %cst_36 = arith.constant dense<0.000000e+00> : vector<8x128xf32>
    %88 = tpu.matmul %87, %1, %cst_36 {dimension_numbers = #tpu.dot_dimension_numbers<[1], [0], [0], [1], [0, 0, 1, 1], [], []>} : vector<8x256xbf16>, vector<256x128xbf16>, vector<8x128xf32> -> vector<8x128xf32>
    %89 = arith.addf %88, %4 : vector<8x128xf32>
    %90 = arith.negf %89 : vector<8x128xf32>
    %91 = math.exp %90 : vector<8x128xf32>
    %cst_37 = arith.constant 1.000000e+00 : f32
    %92 = vector.broadcast %cst_37 : f32 to vector<8x128xf32>
    %93 = arith.addf %92, %91 : vector<8x128xf32>
    %94 = arith.divf %92, %93 : vector<8x128xf32>
    %c3 = arith.constant 3 : index
    %c0_38 = arith.constant 0 : index
    %c0_39 = arith.constant 0 : index
    %95 = vector.load %arg6[%c3, %c0_38, %c0_39] : memref<5x8x128xf32, #tpu.memory_space<vmem>>, vector<1x8x128xf32>
    %96 = vector.shape_cast %95 : vector<1x8x128xf32> to vector<8x128xf32>
    %97 = arith.cmpf ogt, %94, %96 : vector<8x128xf32>
    %98 = arith.extui %97 : vector<8x128xi1> to vector<8x128xi32>
    %99 = arith.sitofp %98 : vector<8x128xi32> to vector<8x128xf32>
    %100 = arith.truncf %99 : vector<8x128xf32> to vector<8x128xbf16>
    %cst_40 = arith.constant dense<0.000000e+00> : vector<8x256xf32>
    %101 = tpu.matmul %100, %0, %cst_40 {dimension_numbers = #tpu.dot_dimension_numbers<[1], [0], [0], [1], [0, 0, 1, 1], [], []>} : vector<8x128xbf16>, vector<128x256xbf16>, vector<8x256xf32> -> vector<8x256xf32>
    %102 = arith.addf %101, %7 : vector<8x256xf32>
    %103 = arith.negf %102 : vector<8x256xf32>
    %104 = math.exp %103 : vector<8x256xf32>
    %cst_41 = arith.constant 1.000000e+00 : f32
    %105 = vector.broadcast %cst_41 : f32 to vector<8x256xf32>
    %106 = arith.addf %105, %104 : vector<8x256xf32>
    %107 = arith.divf %105, %106 : vector<8x256xf32>
    %c3_42 = arith.constant 3 : index
    %c0_43 = arith.constant 0 : index
    %c0_44 = arith.constant 0 : index
    %108 = vector.load %arg7[%c3_42, %c0_43, %c0_44] : memref<5x8x256xf32, #tpu.memory_space<vmem>>, vector<1x8x256xf32>
    %109 = vector.shape_cast %108 : vector<1x8x256xf32> to vector<8x256xf32>
    %110 = arith.cmpf ogt, %107, %109 : vector<8x256xf32>
    %111 = arith.extui %110 : vector<8x256xi1> to vector<8x256xi32>
    %112 = arith.sitofp %111 : vector<8x256xi32> to vector<8x256xf32>
    %113 = arith.truncf %112 : vector<8x256xf32> to vector<8x256xbf16>
    %cst_45 = arith.constant dense<0.000000e+00> : vector<8x128xf32>
    %114 = tpu.matmul %113, %1, %cst_45 {dimension_numbers = #tpu.dot_dimension_numbers<[1], [0], [0], [1], [0, 0, 1, 1], [], []>} : vector<8x256xbf16>, vector<256x128xbf16>, vector<8x128xf32> -> vector<8x128xf32>
    %115 = arith.addf %114, %4 : vector<8x128xf32>
    %116 = arith.negf %115 : vector<8x128xf32>
    %117 = math.exp %116 : vector<8x128xf32>
    %cst_46 = arith.constant 1.000000e+00 : f32
    %118 = vector.broadcast %cst_46 : f32 to vector<8x128xf32>
    %119 = arith.addf %118, %117 : vector<8x128xf32>
    %120 = arith.divf %118, %119 : vector<8x128xf32>
    %c4 = arith.constant 4 : index
    %c0_47 = arith.constant 0 : index
    %c0_48 = arith.constant 0 : index
    %121 = vector.load %arg6[%c4, %c0_47, %c0_48] : memref<5x8x128xf32, #tpu.memory_space<vmem>>, vector<1x8x128xf32>
    %122 = vector.shape_cast %121 : vector<1x8x128xf32> to vector<8x128xf32>
    %123 = arith.cmpf ogt, %120, %122 : vector<8x128xf32>
    %124 = arith.extui %123 : vector<8x128xi1> to vector<8x128xi32>
    %125 = arith.sitofp %124 : vector<8x128xi32> to vector<8x128xf32>
    %126 = arith.truncf %125 : vector<8x128xf32> to vector<8x128xbf16>
    %cst_49 = arith.constant dense<0.000000e+00> : vector<8x256xf32>
    %127 = tpu.matmul %126, %0, %cst_49 {dimension_numbers = #tpu.dot_dimension_numbers<[1], [0], [0], [1], [0, 0, 1, 1], [], []>} : vector<8x128xbf16>, vector<128x256xbf16>, vector<8x256xf32> -> vector<8x256xf32>
    %128 = arith.addf %127, %7 : vector<8x256xf32>
    %129 = arith.negf %128 : vector<8x256xf32>
    %130 = math.exp %129 : vector<8x256xf32>
    %cst_50 = arith.constant 1.000000e+00 : f32
    %131 = vector.broadcast %cst_50 : f32 to vector<8x256xf32>
    %132 = arith.addf %131, %130 : vector<8x256xf32>
    %133 = arith.divf %131, %132 : vector<8x256xf32>
    %c4_51 = arith.constant 4 : index
    %c0_52 = arith.constant 0 : index
    %c0_53 = arith.constant 0 : index
    %134 = vector.load %arg7[%c4_51, %c0_52, %c0_53] : memref<5x8x256xf32, #tpu.memory_space<vmem>>, vector<1x8x256xf32>
    %135 = vector.shape_cast %134 : vector<1x8x256xf32> to vector<8x256xf32>
    %136 = arith.cmpf ogt, %133, %135 : vector<8x256xf32>
    %137 = arith.extui %136 : vector<8x256xi1> to vector<8x256xi32>
    %138 = arith.sitofp %137 : vector<8x256xi32> to vector<8x256xf32>
    %139 = arith.truncf %138 : vector<8x256xf32> to vector<8x256xbf16>
    %140 = arith.extf %139 : vector<8x256xbf16> to vector<8x256xf32>
    %c0_54 = arith.constant 0 : index
    %c0_55 = arith.constant 0 : index
    %141 = vector.load %arg8[%c0_54, %c0_55] : memref<8x256xf32, #tpu.memory_space<vmem>>, vector<8x256xf32>
    tpu.vector_store %arg8[%c0_54, %c0_55], %140 {strides = array<i32>} : memref<8x256xf32, #tpu.memory_space<vmem>>, vector<8x256xf32>,
    return
  }
  func.func @transform_0(%arg0: i32) -> (i32, i32) {
    %c0_i32 = arith.constant 0 : i32
    %c0_i32_0 = arith.constant 0 : i32
    return %arg0, %c0_i32 : i32, i32
  }
  func.func @transform_1(%arg0: i32) -> (i32, i32) {
    %c0_i32 = arith.constant 0 : i32
    %c0_i32_0 = arith.constant 0 : i32
    %c0_i32_1 = arith.constant 0 : i32
    return %c0_i32, %c0_i32_0 : i32, i32
  }
  func.func @transform_2(%arg0: i32) -> (i32, i32) {
    %c0_i32 = arith.constant 0 : i32
    %c0_i32_0 = arith.constant 0 : i32
    %c0_i32_1 = arith.constant 0 : i32
    return %c0_i32, %c0_i32_0 : i32, i32
  }
  func.func @transform_3(%arg0: i32) -> (i32, i32) {
    %c0_i32 = arith.constant 0 : i32
    %c0_i32_0 = arith.constant 0 : i32
    %c0_i32_1 = arith.constant 0 : i32
    return %c0_i32, %c0_i32_0 : i32, i32
  }
  func.func @transform_4(%arg0: i32) -> (i32, i32) {
    %c0_i32 = arith.constant 0 : i32
    %c0_i32_0 = arith.constant 0 : i32
    %c0_i32_1 = arith.constant 0 : i32
    return %c0_i32, %c0_i32_0 : i32, i32
  }
  func.func @transform_5(%arg0: i32) -> (i32, i32, i32) {
    %c0_i32 = arith.constant 0 : i32
    %c0_i32_0 = arith.constant 0 : i32
    %c0_i32_1 = arith.constant 0 : i32
    return %c0_i32, %arg0, %c0_i32_0 : i32, i32, i32
  }
  func.func @transform_6(%arg0: i32) -> (i32, i32, i32) {
    %c0_i32 = arith.constant 0 : i32
    %c0_i32_0 = arith.constant 0 : i32
    %c0_i32_1 = arith.constant 0 : i32
    return %c0_i32, %arg0, %c0_i32_0 : i32, i32, i32
  }
  func.func @transform_7(%arg0: i32) -> (i32, i32) {
    %c0_i32 = arith.constant 0 : i32
    %c0_i32_0 = arith.constant 0 : i32
    return %arg0, %c0_i32 : i32, i32
  }
}

</mosaic_0001>

<bundles_post_ra>
// kernel: tpu_custom_call.1
= control target key start
LH: loop header
LB: loop body
LE: loop exit
PB: predicated region body
PF: predicated region fallthrough
CT: control target
= control target key end

     0   :  { %12 = vsyncpa [#allocation5], 0  ;;  %s1842_s0 = inlined_call_operand.<no memory space> [shape: s32[1], index: 0, kind: input, shape index: {}]   ;;  %s1843_s1 = inlined_call_operand.hbm [shape: f32[8,256], index: 1, kind: input, shape index: {}]   ;;  %s1844_s2 = inlined_call_operand.hbm [shape: bf16[128,256], index: 2, kind: input, shape index: {}]   ;;  %s1845_s3 = inlined_call_operand.hbm [shape: bf16[256,128], index: 3, kind: input, shape index: {}]   ;;  %s1846_s4 = inlined_call_operand.vmem [shape: f32[1,128], index: 4, kind: input, shape index: {}]   ;;  %s1847_s5 = inlined_call_operand.vmem [shape: f32[1,256], index: 5, kind: input, shape index: {}]   ;;  %s1848_s6 = inlined_call_operand.hbm [shape: f32[8,256], index: 6, kind: output, shape index: {}]  }
   0x1   :  { %13 = vsyncpa [#allocation8], 0 }
   0x2   :  { %14 = vsyncpa [#allocation6], 0  ;;  %s1496_s21 = smov [#allocation7]  }
   0x3   :  { %s30_s22 = sshll.u32 %s1496_s21, 4  ;;  %s31_s22 = int_to_ptr.vmem [resolvable:$true] %s30_s22 }
   0x4   :  { %s1418_s23 = scalar_lea.vmem %s31_s22, 2048  ;;  %p1423_p1 = scmp.lt.s32.totalorder %s31_s22, %s31_s22 }
   0x5   :  { %p1419_p0 = scmp.ne.s32.totalorder %s31_s22, %s1418_s23  ;;  %p1424_p2 = scmp.lt.s32.totalorder %s1418_s23, %s1418_s23 }
   0x7   :  { %p1425_p3 = por %p1424_p2, %p1423_p1 }
   0x9   :  { %p1426_p4 = pnand %p1425_p3, %p1419_p0 }
   0xb   :  { %1429 = shalt.err (!%p1426_p4)
}
   0xc   :  { %s1497_s24 = smov 128   ;;  %s1498_s25 = smov 8  }
   0xd   :  { %36 = dma.hbm_to_vmem [thread:$0]  %s1844_s2, 2048, %s31_s22, [#allocation8], %s1497_s24, %s1497_s24, %s1498_s25  }
   0xe   :  { %s1499_s28 = smov [#allocation4]   ;;  %s1500_s30 = smov [#allocation9]  }
   0xf   :  { %s21_s29 = sshll.u32 %s1499_s28, 4  ;;  %s42_s7 = sshll.u32 %s1500_s30, 4  ;;  %s22_s29 = int_to_ptr.vmem [resolvable:$true] %s21_s29  ;;  %s43_s7 = int_to_ptr.vmem [resolvable:$true] %s42_s7 }
  0x10   :  { %s1438_s8 = scalar_lea.vmem %s22_s29, 256  ;;  %p1443_p6 = scmp.lt.s32.totalorder %s22_s29, %s22_s29 }
  0x11   :  { %p1439_p5 = scmp.ne.s32.totalorder %s22_s29, %s1438_s8  ;;  %p1444_p7 = scmp.lt.s32.totalorder %s1438_s8, %s1438_s8 }
  0x13   :  { %p1445_p8 = por %p1444_p7, %p1443_p6 }
  0x15   :  { %p1446_p9 = pnand %p1445_p8, %p1439_p5 }
  0x17   :  { %1449 = shalt.err (!%p1446_p9)
}
  0x18   :  { %24 = dma.hbm_to_vmem [thread:$0]  %s1843_s1, 256, %s22_s29, [#allocation5]  }
  0x19   :  { %s1458_s11 = scalar_lea.vmem %s43_s7, 2048  ;;  %p1463_p11 = scmp.lt.s32.totalorder %s43_s7, %s43_s7 }
  0x1a   :  { %p1459_p10 = scmp.ne.s32.totalorder %s43_s7, %s1458_s11  ;;  %p1464_p12 = scmp.lt.s32.totalorder %s1458_s11, %s1458_s11 }
  0x1c   :  { %p1465_p13 = por %p1464_p12, %p1463_p11 }
  0x1e   :  { %p1466_p0 = pnand %p1465_p13, %p1459_p10 }
  0x20   :  { %1469 = shalt.err (!%p1466_p0)
}
  0x21   :  { %s1501_s2 = smov 64   ;;  %s1502_s12 = smov 4  }
  0x22   :  { %48 = dma.hbm_to_vmem [thread:$0]  %s1845_s3, 2048, %s43_s7, [#allocation8], %s1501_s2, %s1501_s2, %s1502_s12  }
  0x23   :  { %1490 = dma.done.wait [#allocation5], 256  }
  0x24   :  { %1491 = vsyncadd [#allocation5], 4294967040 }
  0x25   :  { %1492 = dma.done.wait [#allocation8], 4096  }
  0x26   :  { %1493 = vsyncadd [#allocation8], 4294963200  ;;  %v64_v0 = vlaneseq  ;;  %v1554_v1 = vstv %s1842_s0  ;;  %v1559_v7 = vld [vmem:[#allocation9 + $0x78] sm:$0xff]   ;;  %v1564_v10 = vld [vmem:[#allocation9 + $0x70] sm:$0xff]  }
  0x27   :  { %v1561_v8 = vld [vmem:[#allocation9 + $0x38] sm:$0xff]   ;;  %1189 = vmatprep.subr.bf16.mxu0 %v1559_v7  ;;  %v1567_v11 = vld [vmem:[#allocation9 + $0x30] sm:$0xff]   ;;  %v1570_v13 = vld [vmem:[#allocation9 + $0x68] sm:$0xff]   ;;  %v1597_v36 = vxor.u32 466688986, %v1554_v1 }
  0x28   :  { %v70_v2 = vadd.s32 %v1554_v1, %v64_v0  ;;  %1190 = vmatpush3.bf16.msra.mxu0 %v1561_v8  ;;  %v1573_v17 = vld [vmem:[#allocation9 + $0x28] sm:$0xff]   ;;  %v1576_v18 = vld [vmem:[#allocation9 + $0x60] sm:$0xff]   ;;  %v1582_v24 = vld [vmem:[#allocation9 + $0x58] sm:$0xff]  }
  0x29   :  { %1191 = vmatprep.subr.bf16.mxu0 %v1564_v10  ;;  %v1579_v21 = vld [vmem:[#allocation9 + $0x20] sm:$0xff]   ;;  %v1585_v26 = vld [vmem:[#allocation9 + $0x18] sm:$0xff]   ;;  %v1588_v28 = vld [vmem:[#allocation9 + $0x50] sm:$0xff]  }
  0x2a   :  { %v71_v3 = vadd.s32 %v70_v2, %v64_v0  ;;  %v72_v4 = vshll.u32 %v70_v2, 13  ;;  %v73_v5 = vshrl.u32 %v70_v2, 19  ;;  %v256_v29 = vld [vmem:[#allocation4 + $0x8] sm:$0xff]  ;;  %v1590_v30 = vld [vmem:[#allocation9 + $0x10] sm:$0xff]   ;;  %v1592_v33 = vld [vmem:[#allocation9 + $0x48] sm:$0xff]  }
  0x2b   :  { %v258_v31 = vpack.c.bf16 %v256_v29, %v256_v29  ;;  %v1600_v39 = vld [vmem:[#allocation9 + $0x8] sm:$0xff]   ;;  %v1603_v40 = vld [vmem:[#allocation9 + $0x40] sm:$0xff]   ;;  %v255_v45 = vld [vmem:[#allocation4] sm:$0xff] }
  0x2c   :  { %v74_v6 = vor.u32 %v73_v5, %v72_v4  ;;  %1192 = vmatpush3.bf16.msra.mxu0 %v1567_v11  ;;  %v1608_v44 = vld [vmem:[#allocation9] sm:$0xff]   ;;  %v257_v49 = vpack.c.bf16 %v255_v45, %v255_v45 }
  0x2d   :  { %1193 = vmatprep.subr.bf16.mxu0 %v1570_v13  ;;  %387 = vmatprep.mubr.bf16.mxu0 %v258_v31 }
  0x2e   :  { %v75_v9 = vxor.u32 %v74_v6, %v71_v3 }
  0x30   :  { %v77_v12 = vshll.u32 %v75_v9, 15  ;;  %v76_v14 = vadd.s32 %v75_v9, %v71_v3  ;;  %v78_v15 = vshrl.u32 %v75_v9, 17  ;;  %1194 = vmatpush3.bf16.msra.mxu0 %v1573_v17 }
  0x31   :  { %1195 = vmatprep.subr.bf16.mxu0 %v1576_v18 }
  0x32   :  { %v79_v16 = vor.u32 %v78_v15, %v77_v12 }
  0x34   :  { %v80_v19 = vxor.u32 %v79_v16, %v76_v14  ;;  %1196 = vmatpush3.bf16.msra.mxu0 %v1579_v21 }
  0x35   :  { %1197 = vmatprep.subr.bf16.mxu0 %v1582_v24 }
  0x36   :  { %v82_v20 = vshll.u32 %v80_v19, 26  ;;  %v81_v22 = vadd.s32 %v80_v19, %v76_v14  ;;  %v83_v23 = vshrl.u32 %v80_v19, 6 }
  0x38   :  { %v84_v25 = vor.u32 %v83_v23, %v82_v20  ;;  %1198 = vmatpush3.bf16.msra.mxu0 %v1585_v26 }
  0x39   :  { %1199 = vmatprep.subr.bf16.mxu0 %v1588_v28 }
  0x3a   :  { %v85_v27 = vxor.u32 %v84_v25, %v81_v22 }
  0x3c   :  { %v87_v32 = vshll.u32 %v85_v27, 6  ;;  %v86_v34 = vadd.s32 %v85_v27, %v81_v22  ;;  %v88_v35 = vshrl.u32 %v85_v27, 26  ;;  %1200 = vmatpush3.bf16.msra.mxu0 %v1590_v30 }
  0x3d   :  { %1201 = vmatprep.subr.bf16.mxu0 %v1592_v33 }
  0x3e   :  { %v89_v37 = vor.u32 %v88_v35, %v87_v32  ;;  %v91_v41 = vadd.s32 %v86_v34, %v1554_v1 }
  0x40   :  { %v90_v38 = vxor.u32 %v89_v37, %v86_v34  ;;  %1202 = vmatpush3.bf16.msra.mxu0 %v1600_v39 }
  0x41   :  { %1203 = vmatprep.subr.bf16.mxu0 %v1603_v40 }
  0x42   :  { %v92_v42 = vadd.s32 %v90_v38, %v1597_v36 }
  0x44   :  { %v93_v43 = vadd.s32 1, %v92_v42  ;;  %1204 = vmatpush3.bf16.msra.mxu0 %v1608_v44 }
  0x45   :  { %1211 = vmatprep.subr.bf16.mxu0 %v1559_v7 }
  0x46   :  { %v94_v46 = vadd.s32 %v93_v43, %v91_v41  ;;  %v95_v47 = vshll.u32 %v93_v43, 17  ;;  %v96_v48 = vshrl.u32 %v93_v43, 15 }
  0x47   :  { %388 = vmatmul.mubr.bf16.vlgmr.msra.gmra.mxu0 %v257_v49 }
  0x48   :  { %v97_v50 = vor.u32 %v96_v48, %v95_v47  ;;  %1212 = vmatpush3.bf16.msra.mxu0 %v1561_v8 }
  0x49   :  { %1213 = vmatprep.subr.bf16.mxu0 %v1564_v10 }
  0x4a   :  { %v98_v51 = vxor.u32 %v97_v50, %v94_v46 }
  0x4c   :  { %v99_v52 = vadd.s32 %v98_v51, %v94_v46  ;;  %v100_v53 = vshll.u32 %v98_v51, 29  ;;  %v101_v54 = vshrl.u32 %v98_v51, 3  ;;  %1214 = vmatpush3.bf16.msra.mxu0 %v1567_v11 }
  0x4d   :  { %1215 = vmatprep.subr.bf16.mxu0 %v1570_v13 }
  0x4e   :  { %v102_v55 = vor.u32 %v101_v54, %v100_v53 }
  0x50   :  { %v103_v56 = vxor.u32 %v102_v55, %v99_v52  ;;  %1216 = vmatpush3.bf16.msra.mxu0 %v1573_v17 }
  0x51   :  { %1217 = vmatprep.subr.bf16.mxu0 %v1576_v18 }
  0x52   :  { %v104_v57 = vadd.s32 %v103_v56, %v99_v52  ;;  %v105_v58 = vshll.u32 %v103_v56, 16  ;;  %v106_v59 = vshrl.u32 %v103_v56, 16 }
  0x54   :  { %v107_v60 = vor.u32 %v106_v59, %v105_v58  ;;  %1218 = vmatpush3.bf16.msra.mxu0 %v1579_v21 }
  0x55   :  { %1219 = vmatprep.subr.bf16.mxu0 %v1582_v24 }
  0x56   :  { %v108_v61 = vxor.u32 %v107_v60, %v104_v57 }
  0x58   :  { %v109_v62 = vadd.s32 %v108_v61, %v104_v57  ;;  %v110_v63 = vshll.u32 %v108_v61, 24  ;;  %v111_v2 = vshrl.u32 %v108_v61, 8  ;;  %1220 = vmatpush3.bf16.msra.mxu0 %v1585_v26 }
  0x59   :  { %1221 = vmatprep.subr.bf16.mxu0 %v1588_v28 }
  0x5a   :  { %v112_v3 = vor.u32 %v111_v2, %v110_v63  ;;  %v114_v5 = vadd.s32 %v109_v62, %v1597_v36 }
  0x5c   :  { %v113_v4 = vxor.u32 %v112_v3, %v109_v62  ;;  %1222 = vmatpush3.bf16.msra.mxu0 %v1590_v30 }
  0x5d   :  { %1223 = vmatprep.subr.bf16.mxu0 %v1592_v33 }
  0x5e   :  { %v116_v6 = vadd.s32 2, %v113_v4  ;;  %v1631_v4 = vld [vmem:[#allocation7 + $0x74] ss:$8 sps:$4 sm:$0xff]  }
  0x5f   :  { %490 = vmatprep.subr.bf16.mxu1 %v1631_v4 }
  0x60   :  { %v117_v9 = vadd.s32 %v116_v6, %v114_v5  ;;  %v118_v12 = vshll.u32 %v116_v6, 13  ;;  %v119_v14 = vshrl.u32 %v116_v6, 19  ;;  %1224 = vmatpush3.bf16.msra.mxu0 %v1600_v39  ;;  %v1633_v5 = vld [vmem:[#allocation7 + $0x70] ss:$8 sps:$4 sm:$0xff]  }
  0x61   :  { %1225 = vmatprep.subr.bf16.mxu0 %v1603_v40  ;;  %491 = vmatpush1.bf16.msra.mxu1 %v1633_v5 }
  0x62   :  { %v120_v15 = vor.u32 %v119_v14, %v118_v12  ;;  %v1639_v14 = vld [vmem:[#allocation7 + $0x64] ss:$8 sps:$4 sm:$0xff]  }
  0x63   :  { %492 = vmatprep.subr.bf16.mxu1 %v1639_v14 }
  0x64   :  { %v121_v16 = vxor.u32 %v120_v15, %v117_v9  ;;  %1226 = vmatpush3.bf16.msra.mxu0 %v1608_v44  ;;  %v1641_v15 = vld [vmem:[#allocation7 + $0x60] ss:$8 sps:$4 sm:$0xff]  }
  0x65   :  { %1233 = vmatprep.subr.bf16.mxu0 %v1559_v7  ;;  %493 = vmatpush1.bf16.msra.mxu1 %v1641_v15 }
  0x66   :  { %v122_v19 = vadd.s32 %v121_v16, %v117_v9  ;;  %v123_v20 = vshll.u32 %v121_v16, 15  ;;  %v124_v22 = vshrl.u32 %v121_v16, 17 }
  0x68   :  { %v125_v23 = vor.u32 %v124_v22, %v123_v20 }
  0x6a   :  { %v126_v25 = vxor.u32 %v125_v23, %v122_v19  ;;  %v1647_v23 = vld [vmem:[#allocation7 + $0x50] ss:$8 sps:$4 sm:$0xff]  }
  0x6c   :  { %v127_v27 = vadd.s32 %v126_v25, %v122_v19  ;;  %v128_v29 = vshll.u32 %v126_v25, 26  ;;  %v129_v31 = vshrl.u32 %v126_v25, 6 }
  0x6e   :  { %v130_v32 = vor.u32 %v129_v31, %v128_v29 }
  0x70   :  { %v131_v34 = vxor.u32 %v130_v32, %v127_v27  ;;  %v1651_v32 = vld [vmem:[#allocation7 + $0x44] ss:$8 sps:$4 sm:$0xff]  }
  0x72   :  { %v132_v35 = vadd.s32 %v131_v34, %v127_v27  ;;  %v133_v37 = vshll.u32 %v131_v34, 6  ;;  %v134_v38 = vshrl.u32 %v131_v34, 26  ;;  %v1653_v34 = vld [vmem:[#allocation7 + $0x40] ss:$8 sps:$4 sm:$0xff]  }
  0x74   :  { %v135_v41 = vor.u32 %v134_v38, %v133_v37  ;;  %v1657_v38 = vld [vmem:[#allocation7 + $0x34] ss:$8 sps:$4 sm:$0xff]  }
  0x76   :  { %v136_v42 = vxor.u32 %v135_v41, %v132_v35  ;;  %v1659_v41 = vld [vmem:[#allocation7 + $0x30] ss:$8 sps:$4 sm:$0xff]  }
  0x78   :  { %v138_v43 = vadd.s32 %v136_v42, %v1554_v1 }
  0x7a   :  { %v139_v45 = vadd.s32 3, %v138_v43 }
  0x7c   :  { %v140_v46 = vadd.s32 %v139_v45, %v132_v35  ;;  %v141_v47 = vshll.u32 %v139_v45, 17  ;;  %v142_v48 = vshrl.u32 %v139_v45, 15 }
  0x7e   :  { %v143_v49 = vor.u32 %v142_v48, %v141_v47  ;;  %v1665_v47 = vld [vmem:[#allocation7 + $0x20] ss:$8 sps:$4 sm:$0xff]  }
  0x80   :  { %v144_v50 = vxor.u32 %v143_v49, %v140_v46 }
  0x82   :  { %v145_v51 = vadd.s32 %v144_v50, %v140_v46  ;;  %v146_v52 = vshll.u32 %v144_v50, 29  ;;  %v147_v53 = vshrl.u32 %v144_v50, 3  ;;  %v1662_v46 = vld [vmem:[#allocation7 + $0x24] ss:$8 sps:$4 sm:$0xff]  }
  0x84   :  { %v148_v54 = vor.u32 %v147_v53, %v146_v52  ;;  %v1669_v53 = vld [vmem:[#allocation7 + $0x14] ss:$8 sps:$4 sm:$0xff]  }
  0x86   :  { %v149_v55 = vxor.u32 %v148_v54, %v145_v51 }
  0x88   :  { %v150_v56 = vadd.s32 %v149_v55, %v145_v51  ;;  %v151_v57 = vshll.u32 %v149_v55, 16  ;;  %v152_v58 = vshrl.u32 %v149_v55, 16  ;;  %v1671_v55 = vld [vmem:[#allocation7 + $0x10] ss:$8 sps:$4 sm:$0xff]  }
  0x8a   :  { %v153_v59 = vor.u32 %v152_v58, %v151_v57  ;;  %v1676_v58 = vld [vmem:[#allocation7 + $0x4] ss:$8 sps:$4 sm:$0xff]  }
  0x8c   :  { %v154_v60 = vxor.u32 %v153_v59, %v150_v56 }
  0x8e   :  { %v155_v61 = vadd.s32 %v154_v60, %v150_v56  ;;  %v156_v62 = vshll.u32 %v154_v60, 24  ;;  %v157_v63 = vshrl.u32 %v154_v60, 8  ;;  %v1678_v60 = vld [vmem:[#allocation7] ss:$8 sps:$4 sm:$0xff]  }
  0x90   :  { %v158_v2 = vor.u32 %v157_v63, %v156_v62  ;;  %v160_v6 = vadd.s32 %v155_v61, %v1554_v1  ;;  %v1645_v1 = vld [vmem:[#allocation7 + $0x54] ss:$8 sps:$4 sm:$0xff]   ;;  %v1503_v62 = vmov 0  }
  0x91   :  { %494 = vmatprep.subr.bf16.mxu1 %v1645_v1  ;;  %522 = vmatprep.mubr.bf16.mxu1 %v1503_v62 }
  0x92   :  { %v159_v3 = vxor.u32 %v158_v2, %v155_v61  ;;  %495 = vmatpush1.bf16.msra.mxu1 %v1647_v23 }
  0x93   :  { %496 = vmatprep.subr.bf16.mxu1 %v1651_v32 }
  0x94   :  { %v161_v9 = vadd.s32 %v159_v3, %v1597_v36 }
  0x96   :  { %v162_v12 = vadd.s32 4, %v161_v9  ;;  %497 = vmatpush1.bf16.msra.mxu1 %v1653_v34 }
  0x97   :  { %498 = vmatprep.subr.bf16.mxu1 %v1657_v38 }
  0x98   :  { %v163_v16 = vadd.s32 %v162_v12, %v160_v6  ;;  %v164_v19 = vshll.u32 %v162_v12, 13  ;;  %v165_v20 = vshrl.u32 %v162_v12, 19 }
  0x9a   :  { %v166_v22 = vor.u32 %v165_v20, %v164_v19  ;;  %499 = vmatpush1.bf16.msra.mxu1 %v1659_v41 }
  0x9b   :  { %500 = vmatprep.subr.bf16.mxu1 %v1662_v46 }
  0x9c   :  { %v167_v25 = vxor.u32 %v166_v22, %v163_v16 }
  0x9e   :  { %v168_v27 = vadd.s32 %v167_v25, %v163_v16  ;;  %v169_v29 = vshll.u32 %v167_v25, 15  ;;  %v170_v31 = vshrl.u32 %v167_v25, 17  ;;  %501 = vmatpush1.bf16.msra.mxu1 %v1665_v47 }
  0x9f   :  { %502 = vmatprep.subr.bf16.mxu1 %v1669_v53 }
  0xa0   :  { %v171_v35 = vor.u32 %v170_v31, %v169_v29 }
  0xa2   :  { %v172_v37 = vxor.u32 %v171_v35, %v168_v27  ;;  %503 = vmatpush1.bf16.msra.mxu1 %v1671_v55  ;;  %v1504_v35 = vmov 1.0|1.0  }
  0xa3   :  { %504 = vmatprep.subr.bf16.mxu1 %v1676_v58 }
  0xa4   :  { %v173_v42 = vadd.s32 %v172_v37, %v168_v27  ;;  %v174_v43 = vshll.u32 %v172_v37, 26  ;;  %v175_v45 = vshrl.u32 %v172_v37, 6  ;;  %v246_v37 = vshrl.u32 %v64_v0, 7 }
  0xa6   :  { %v176_v48 = vor.u32 %v175_v45, %v174_v43  ;;  %505 = vmatpush1.bf16.msra.mxu1 %v1678_v60  ;;  %v243_v43 = vld [vmem:[%s1847_s5] sm:$0x3]  ;;  %v251_v45 = vsub.s32 1, %v246_v37  ;;  %s1505_s5 = smov [#allocation10]  }
  0xa7   :  { %616 = vmatprep.subr.bf16.mxu1 %v1631_v4  ;;  %s1075_s17 = sshll.u32 %s1505_s5, 4  ;;  %s1076_s17 = int_to_ptr.vmem [resolvable:$true] %s1075_s17 }
  0xa8   :  { %v177_v49 = vxor.u32 %v176_v48, %v173_v42  ;;  %s1470_s18 = scalar_lea.vmem %s1076_s17, 256  ;;  %p1475_p2 = scmp.lt.s32.totalorder %s1076_s17, %s1076_s17 }
  0xa9   :  { %p1471_p1 = scmp.ne.s32.totalorder %s1076_s17, %s1470_s18  ;;  %p1476_p3 = scmp.lt.s32.totalorder %s1470_s18, %s1470_s18 }
  0xaa   :  { %v178_v50 = vadd.s32 %v177_v49, %v173_v42  ;;  %v179_v51 = vshll.u32 %v177_v49, 6  ;;  %v180_v52 = vshrl.u32 %v177_v49, 26  ;;  %v247_v42 = vsub.s32 0, %v246_v37 }
  0xab   :  { %v1714_v49 = vrot.slane %v243_v43, %v251_v45  ;;  %p1477_p4 = por %p1476_p3, %p1475_p2 }
  0xac   :  { %v181_v54 = vor.u32 %v180_v52, %v179_v51  ;;  %v183_v57 = vadd.s32 %v178_v50, %v1597_v36  ;;  %v1687_v36 = vld [vmem:[%s1846_s4] ss:$0 sm:$0xff]  ;;  %v1712_v48 = vrot.slane %v243_v43, %v247_v42 }
  0xad   :  { %p1478_p5 = pnand %p1477_p4, %p1471_p1 }
  0xae   :  { %v182_v56 = vxor.u32 %v181_v54, %v178_v50 }
  0xb0   :  { %v185_v59 = vadd.s32 5, %v182_v56 }
  0xb2   :  { %v186_v61 = vxor.u32 %v185_v59, %v183_v57 }
  0xb4   :  { %187 = set.rngseed %v186_v61 }
  0xb5   :  { %v401_v22 = vrng }
  0xb6   :  { %v402_v25 = vand.u32 8388607, %v401_v22 }
  0xb8   :  { %v403_v27 = vor.u32 1065353216, %v402_v25 }
  0xba   :  { %v1103_v29 = vadd.f32 -1.0, %v403_v27 }
 0x107   :  { %v1205_v63 = vpop.f32.mrf.mxu0 }
 0x109   :  { %v1206_v2 = vpop.f32.mrf.mxu0 }
 0x10a   :  { %v1207_v3 = vadd.f32 %v1206_v2, %v1205_v63  ;;  %v543_v2 = vrng }
 0x10b   :  { %v1208_v6 = vpop.f32.mrf.mxu0 }
 0x10c   :  { %v390_v9 = vadd.f32 %v1207_v3, %v1687_v36 }
 0x10d   :  { %v1209_v12 = vpop.f32.mrf.mxu0 }
 0x10e   :  { %v1102_v16 = vmul.f32 -1.442695, %v390_v9  ;;  %v544_v9 = vrng  ;;  %v545_v12 = vand.u32 8388607, %v543_v2 }
 0x110   :  { %1350 = vpow2.f32 %v1102_v16  ;;  %v546_v16 = vand.u32 8388607, %v544_v9 }
 0x11d   :  { %v1351_v19 = vpop.eup %1350 }
 0x11e   :  { %v398_v20 = vadd.f32 1.0, %v1351_v19  ;;  %v547_v19 = vor.u32 1065353216, %v545_v12 }
 0x120   :  { %1352 = vrcp.f32 %v398_v20  ;;  %v548_v20 = vor.u32 1065353216, %v546_v16  ;;  %v1125_v22 = vadd.f32 -1.0, %v547_v19 }
 0x122   :  { %v1126_v25 = vadd.f32 -1.0, %v548_v20 }
 0x12d   :  { %v1353_v31 = vpop.eup %1352 }
 0x12e   :  { %vm406_vm0 = vcmp.gt.f32.partialorder %v1353_v31, %v1103_v29 }
 0x12f   :  { %vm1121_vm1 = vmpackc.low %vm406_vm0, %vm406_vm0 }
 0x130   :  { %1122 = vmatmul.mubr.msk.bf16.vlgmr.msra.gmra.mxu1 %vm1121_vm1, %v1504_v35 }
 0x131   :  { %617 = vmatpush1.bf16.msra.mxu1 %v1633_v5  ;;  %648 = vmatprep.mubr.bf16.mxu1 %v1503_v62 }
 0x132   :  { %618 = vmatprep.subr.bf16.mxu1 %v1639_v14 }
 0x135   :  { %619 = vmatpush1.bf16.msra.mxu1 %v1641_v15 }
 0x136   :  { %620 = vmatprep.subr.bf16.mxu1 %v1645_v1 }
 0x139   :  { %621 = vmatpush1.bf16.msra.mxu1 %v1647_v23 }
 0x13a   :  { %622 = vmatprep.subr.bf16.mxu1 %v1651_v32 }
 0x13d   :  { %623 = vmatpush1.bf16.msra.mxu1 %v1653_v34 }
 0x13e   :  { %624 = vmatprep.subr.bf16.mxu1 %v1657_v38 }
 0x141   :  { %625 = vmatpush1.bf16.msra.mxu1 %v1659_v41 }
 0x142   :  { %626 = vmatprep.subr.bf16.mxu1 %v1662_v46 }
 0x145   :  { %627 = vmatpush1.bf16.msra.mxu1 %v1665_v47 }
 0x146   :  { %628 = vmatprep.subr.bf16.mxu1 %v1669_v53 }
 0x149   :  { %629 = vmatpush1.bf16.msra.mxu1 %v1671_v55 }
 0x14a   :  { %630 = vmatprep.subr.bf16.mxu1 %v1676_v58 }
 0x14d   :  { %631 = vmatpush1.bf16.msra.mxu1 %v1678_v60 }
 0x14e   :  { %742 = vmatprep.subr.bf16.mxu1 %v1631_v4 }
 0x1f0   :  { %v524_v50 = vpop.f32.mrf.mxu1 }
 0x1f1   :  { %v525_v51 = vadd.f32 %v524_v50, %v1712_v48 }
 0x1f2   :  { %v526_v52 = vpop.f32.mrf.mxu1 }
 0x1f3   :  { %v1123_v54 = vmul.f32 -1.442695, %v525_v51  ;;  %v527_v56 = vadd.f32 %v526_v52, %v1714_v49 }
 0x1f4   :  { %v528_v57 = vpop.f32.mrf.mxu1 }
 0x1f5   :  { %1354 = vpow2.f32 %v1123_v54  ;;  %v1124_v0 = vmul.f32 -1.442695, %v527_v56  ;;  %v607_v56 = vrng }
 0x1f6   :  { %v529_v59 = vpop.f32.mrf.mxu1  ;;  %v608_v57 = vand.u32 8388607, %v607_v56 }
 0x1f7   :  { %1356 = vpow2.f32 %v1124_v0 }
 0x1f8   :  { %v609_v0 = vor.u32 1065353216, %v608_v57 }
 0x1fa   :  { %v1134_v59 = vadd.f32 -1.0, %v609_v0 }
 0x202   :  { %v1355_v61 = vpop.eup %1354 }
 0x203   :  { %v537_v63 = vadd.f32 1.0, %v1355_v61 }
 0x204   :  { %v1357_v3 = vpop.eup %1356 }
 0x205   :  { %1358 = vrcp.f32 %v537_v63  ;;  %v538_v6 = vadd.f32 1.0, %v1357_v3 }
 0x207   :  { %1360 = vrcp.f32 %v538_v6 }
 0x212   :  { %v1359_v27 = vpop.eup %1358 }
 0x213   :  { %vm553_vm2 = vcmp.gt.f32.partialorder %v1359_v27, %v1125_v22 }
 0x214   :  { %v1361_v29 = vpop.eup %1360  ;;  %vm1131_vm5 = vmpackc.low %vm553_vm2, %vm553_vm2 }
 0x215   :  { %vm554_vm3 = vcmp.gt.f32.partialorder %v1361_v29, %v1126_v25  ;;  %v669_v25 = vrng }
 0x216   :  { %vm1129_vm4 = vmpackc.low %vm554_vm3, %vm554_vm3 }
 0x217   :  { %1130 = vmatprep.mubr.msk.bf16.mxu0 %vm1129_vm4, %v1504_v35 }
 0x218   :  { %1132 = vmatmul.mubr.msk.bf16.vlgmr.msra.gmra.mxu0 %vm1131_vm5, %v1504_v35 }
 0x219   :  { %1234 = vmatpush3.bf16.msra.mxu0 %v1561_v8 }
 0x21a   :  { %1235 = vmatprep.subr.bf16.mxu0 %v1564_v10 }
 0x21d   :  { %1236 = vmatpush3.bf16.msra.mxu0 %v1567_v11 }
 0x21e   :  { %1237 = vmatprep.subr.bf16.mxu0 %v1570_v13 }
 0x221   :  { %1238 = vmatpush3.bf16.msra.mxu0 %v1573_v17 }
 0x222   :  { %1239 = vmatprep.subr.bf16.mxu0 %v1576_v18 }
 0x225   :  { %1240 = vmatpush3.bf16.msra.mxu0 %v1579_v21 }
 0x226   :  { %1241 = vmatprep.subr.bf16.mxu0 %v1582_v24 }
 0x229   :  { %1242 = vmatpush3.bf16.msra.mxu0 %v1585_v26 }
 0x22a   :  { %1243 = vmatprep.subr.bf16.mxu0 %v1588_v28 }
 0x22d   :  { %1244 = vmatpush3.bf16.msra.mxu0 %v1590_v30 }
 0x22e   :  { %1245 = vmatprep.subr.bf16.mxu0 %v1592_v33 }
 0x231   :  { %1246 = vmatpush3.bf16.msra.mxu0 %v1600_v39 }
 0x232   :  { %1247 = vmatprep.subr.bf16.mxu0 %v1603_v40 }
 0x235   :  { %1248 = vmatpush3.bf16.msra.mxu0 %v1608_v44 }
 0x236   :  { %1255 = vmatprep.subr.bf16.mxu0 %v1559_v7 }
 0x2d8   :  { %v1227_v31 = vpop.f32.mrf.mxu0 }
 0x2da   :  { %v1228_v37 = vpop.f32.mrf.mxu0 }
 0x2db   :  { %v1229_v42 = vadd.f32 %v1228_v37, %v1227_v31  ;;  %v670_v31 = vrng  ;;  %v671_v37 = vand.u32 8388607, %v669_v25 }
 0x2dc   :  { %v1230_v43 = vpop.f32.mrf.mxu0 }
 0x2dd   :  { %v596_v45 = vadd.f32 %v1229_v42, %v1687_v36  ;;  %v672_v42 = vand.u32 8388607, %v670_v31  ;;  %v673_v43 = vor.u32 1065353216, %v671_v37 }
 0x2de   :  { %v1231_v50 = vpop.f32.mrf.mxu0 }
 0x2df   :  { %v1133_v51 = vmul.f32 -1.442695, %v596_v45  ;;  %v674_v45 = vor.u32 1065353216, %v672_v42  ;;  %v1140_v50 = vadd.f32 -1.0, %v673_v43 }
 0x2e1   :  { %1362 = vpow2.f32 %v1133_v51  ;;  %v1141_v51 = vadd.f32 -1.0, %v674_v45 }
 0x2ee   :  { %v1363_v52 = vpop.eup %1362 }
 0x2ef   :  { %v604_v54 = vadd.f32 1.0, %v1363_v52 }
 0x2f1   :  { %1364 = vrcp.f32 %v604_v54 }
 0x2fe   :  { %v1365_v61 = vpop.eup %1364 }
 0x2ff   :  { %vm612_vm6 = vcmp.gt.f32.partialorder %v1365_v61, %v1134_v59 }
 0x300   :  { %vm1136_vm7 = vmpackc.low %vm612_vm6, %vm612_vm6 }
 0x301   :  { %1137 = vmatmul.mubr.msk.bf16.vlgmr.msra.gmra.mxu1 %vm1136_vm7, %v1504_v35 }
 0x302   :  { %743 = vmatpush1.bf16.msra.mxu1 %v1633_v5  ;;  %774 = vmatprep.mubr.bf16.mxu1 %v1503_v62 }
 0x303   :  { %744 = vmatprep.subr.bf16.mxu1 %v1639_v14 }
 0x306   :  { %745 = vmatpush1.bf16.msra.mxu1 %v1641_v15 }
 0x307   :  { %746 = vmatprep.subr.bf16.mxu1 %v1645_v1 }
 0x30a   :  { %747 = vmatpush1.bf16.msra.mxu1 %v1647_v23 }
 0x30b   :  { %748 = vmatprep.subr.bf16.mxu1 %v1651_v32 }
 0x30e   :  { %749 = vmatpush1.bf16.msra.mxu1 %v1653_v34 }
 0x30f   :  { %750 = vmatprep.subr.bf16.mxu1 %v1657_v38 }
 0x312   :  { %751 = vmatpush1.bf16.msra.mxu1 %v1659_v41 }
 0x313   :  { %752 = vmatprep.subr.bf16.mxu1 %v1662_v46 }
 0x316   :  { %753 = vmatpush1.bf16.msra.mxu1 %v1665_v47 }
 0x317   :  { %754 = vmatprep.subr.bf16.mxu1 %v1669_v53 }
 0x31a   :  { %755 = vmatpush1.bf16.msra.mxu1 %v1671_v55 }
 0x31b   :  { %756 = vmatprep.subr.bf16.mxu1 %v1676_v58 }
 0x31e   :  { %757 = vmatpush1.bf16.msra.mxu1 %v1678_v60 }
 0x31f   :  { %868 = vmatprep.subr.bf16.mxu1 %v1631_v4 }
 0x3c1   :  { %v650_v63 = vpop.f32.mrf.mxu1 }
 0x3c2   :  { %v651_v2 = vadd.f32 %v650_v63, %v1712_v48 }
 0x3c3   :  { %v652_v3 = vpop.f32.mrf.mxu1 }
 0x3c4   :  { %v1138_v6 = vmul.f32 -1.442695, %v651_v2  ;;  %v653_v9 = vadd.f32 %v652_v3, %v1714_v49 }
 0x3c5   :  { %v654_v12 = vpop.f32.mrf.mxu1 }
 0x3c6   :  { %1366 = vpow2.f32 %v1138_v6  ;;  %v1139_v16 = vmul.f32 -1.442695, %v653_v9  ;;  %v733_v9 = vrng }
 0x3c7   :  { %v655_v19 = vpop.f32.mrf.mxu1  ;;  %v734_v12 = vand.u32 8388607, %v733_v9 }
 0x3c8   :  { %1368 = vpow2.f32 %v1139_v16 }
 0x3c9   :  { %v735_v16 = vor.u32 1065353216, %v734_v12 }
 0x3cb   :  { %v1149_v19 = vadd.f32 -1.0, %v735_v16 }
 0x3d3   :  { %v1367_v20 = vpop.eup %1366 }
 0x3d4   :  { %v663_v22 = vadd.f32 1.0, %v1367_v20 }
 0x3d5   :  { %v1369_v27 = vpop.eup %1368 }
 0x3d6   :  { %1370 = vrcp.f32 %v663_v22  ;;  %v664_v29 = vadd.f32 1.0, %v1369_v27 }
 0x3d8   :  { %1372 = vrcp.f32 %v664_v29 }
 0x3e3   :  { %v1371_v52 = vpop.eup %1370 }
 0x3e4   :  { %vm679_vm8 = vcmp.gt.f32.partialorder %v1371_v52, %v1140_v50  ;;  %v795_v50 = vrng }
 0x3e5   :  { %v1373_v54 = vpop.eup %1372  ;;  %vm1146_vm11 = vmpackc.low %vm679_vm8, %vm679_vm8 }
 0x3e6   :  { %vm680_vm9 = vcmp.gt.f32.partialorder %v1373_v54, %v1141_v51  ;;  %v796_v54 = vrng }
 0x3e7   :  { %vm1144_vm10 = vmpackc.low %vm680_vm9, %vm680_vm9 }
 0x3e8   :  { %1145 = vmatprep.mubr.msk.bf16.mxu0 %vm1144_vm10, %v1504_v35 }
 0x3e9   :  { %1147 = vmatmul.mubr.msk.bf16.vlgmr.msra.gmra.mxu0 %vm1146_vm11, %v1504_v35 }
 0x3ea   :  { %1256 = vmatpush3.bf16.msra.mxu0 %v1561_v8 }
 0x3eb   :  { %1257 = vmatprep.subr.bf16.mxu0 %v1564_v10 }
 0x3ee   :  { %1258 = vmatpush3.bf16.msra.mxu0 %v1567_v11 }
 0x3ef   :  { %1259 = vmatprep.subr.bf16.mxu0 %v1570_v13 }
 0x3f2   :  { %1260 = vmatpush3.bf16.msra.mxu0 %v1573_v17 }
 0x3f3   :  { %1261 = vmatprep.subr.bf16.mxu0 %v1576_v18 }
 0x3f6   :  { %1262 = vmatpush3.bf16.msra.mxu0 %v1579_v21 }
 0x3f7   :  { %1263 = vmatprep.subr.bf16.mxu0 %v1582_v24 }
 0x3fa   :  { %1264 = vmatpush3.bf16.msra.mxu0 %v1585_v26 }
 0x3fb   :  { %1265 = vmatprep.subr.bf16.mxu0 %v1588_v28 }
 0x3fe   :  { %1266 = vmatpush3.bf16.msra.mxu0 %v1590_v30 }
 0x3ff   :  { %1267 = vmatprep.subr.bf16.mxu0 %v1592_v33 }
 0x402   :  { %1268 = vmatpush3.bf16.msra.mxu0 %v1600_v39 }
 0x403   :  { %1269 = vmatprep.subr.bf16.mxu0 %v1603_v40 }
 0x406   :  { %1270 = vmatpush3.bf16.msra.mxu0 %v1608_v44 }
 0x407   :  { %1277 = vmatprep.subr.bf16.mxu0 %v1559_v7 }
 0x4a9   :  { %v1249_v56 = vpop.f32.mrf.mxu0 }
 0x4ab   :  { %v1250_v57 = vpop.f32.mrf.mxu0 }
 0x4ac   :  { %v1251_v0 = vadd.f32 %v1250_v57, %v1249_v56  ;;  %v798_v56 = vand.u32 8388607, %v796_v54 }
 0x4ad   :  { %v1252_v59 = vpop.f32.mrf.mxu0 }
 0x4ae   :  { %v722_v61 = vadd.f32 %v1251_v0, %v1687_v36  ;;  %v800_v0 = vor.u32 1065353216, %v798_v56 }
 0x4af   :  { %v1253_v63 = vpop.f32.mrf.mxu0 }
 0x4b0   :  { %v1148_v2 = vmul.f32 -1.442695, %v722_v61  ;;  %v1156_v61 = vadd.f32 -1.0, %v800_v0 }
 0x4b2   :  { %1374 = vpow2.f32 %v1148_v2 }
 0x4bf   :  { %v1375_v3 = vpop.eup %1374 }
 0x4c0   :  { %v730_v6 = vadd.f32 1.0, %v1375_v3 }
 0x4c2   :  { %1376 = vrcp.f32 %v730_v6 }
 0x4cf   :  { %v1377_v20 = vpop.eup %1376 }
 0x4d0   :  { %vm738_vm12 = vcmp.gt.f32.partialorder %v1377_v20, %v1149_v19 }
 0x4d1   :  { %vm1151_vm13 = vmpackc.low %vm738_vm12, %vm738_vm12 }
 0x4d2   :  { %1152 = vmatmul.mubr.msk.bf16.vlgmr.msra.gmra.mxu1 %vm1151_vm13, %v1504_v35 }
 0x4d3   :  { %869 = vmatpush1.bf16.msra.mxu1 %v1633_v5  ;;  %900 = vmatprep.mubr.bf16.mxu1 %v1503_v62 }
 0x4d4   :  { %870 = vmatprep.subr.bf16.mxu1 %v1639_v14 }
 0x4d7   :  { %871 = vmatpush1.bf16.msra.mxu1 %v1641_v15 }
 0x4d8   :  { %872 = vmatprep.subr.bf16.mxu1 %v1645_v1 }
 0x4db   :  { %873 = vmatpush1.bf16.msra.mxu1 %v1647_v23 }
 0x4dc   :  { %874 = vmatprep.subr.bf16.mxu1 %v1651_v32 }
 0x4df   :  { %875 = vmatpush1.bf16.msra.mxu1 %v1653_v34 }
 0x4e0   :  { %876 = vmatprep.subr.bf16.mxu1 %v1657_v38 }
 0x4e3   :  { %877 = vmatpush1.bf16.msra.mxu1 %v1659_v41 }
 0x4e4   :  { %878 = vmatprep.subr.bf16.mxu1 %v1662_v46 }
 0x4e7   :  { %879 = vmatpush1.bf16.msra.mxu1 %v1665_v47 }
 0x4e8   :  { %880 = vmatprep.subr.bf16.mxu1 %v1669_v53 }
 0x4eb   :  { %881 = vmatpush1.bf16.msra.mxu1 %v1671_v55 }
 0x4ec   :  { %882 = vmatprep.subr.bf16.mxu1 %v1676_v58 }
 0x4ef   :  { %883 = vmatpush1.bf16.msra.mxu1 %v1678_v60 }
 0x4f0   :  { %994 = vmatprep.subr.bf16.mxu1 %v1631_v4  ;;  %v797_v4 = vand.u32 8388607, %v795_v50 }
 0x4f2   :  { %v799_v57 = vor.u32 1065353216, %v797_v4 }
 0x4f4   :  { %v1155_v59 = vadd.f32 -1.0, %v799_v57 }
 0x592   :  { %v776_v7 = vpop.f32.mrf.mxu1 }
 0x593   :  { %v777_v22 = vadd.f32 %v776_v7, %v1712_v48 }
 0x594   :  { %v778_v25 = vpop.f32.mrf.mxu1 }
 0x595   :  { %v1153_v27 = vmul.f32 -1.442695, %v777_v22  ;;  %v779_v29 = vadd.f32 %v778_v25, %v1714_v49 }
 0x596   :  { %v780_v31 = vpop.f32.mrf.mxu1 }
 0x597   :  { %1378 = vpow2.f32 %v1153_v27  ;;  %v1154_v37 = vmul.f32 -1.442695, %v779_v29 }
 0x598   :  { %v781_v42 = vpop.f32.mrf.mxu1 }
 0x599   :  { %1380 = vpow2.f32 %v1154_v37 }
 0x5a4   :  { %v1379_v43 = vpop.eup %1378 }
 0x5a5   :  { %v789_v45 = vadd.f32 1.0, %v1379_v43 }
 0x5a6   :  { %v1381_v51 = vpop.eup %1380 }
 0x5a7   :  { %1382 = vrcp.f32 %v789_v45  ;;  %v790_v52 = vadd.f32 1.0, %v1381_v51 }
 0x5a9   :  { %1384 = vrcp.f32 %v790_v52 }
 0x5b4   :  { %v1383_v63 = vpop.eup %1382 }
 0x5b5   :  { %vm805_vm14 = vcmp.gt.f32.partialorder %v1383_v63, %v1155_v59 }
 0x5b6   :  { %v1385_v2 = vpop.eup %1384  ;;  %vm1161_vm1 = vmpackc.low %vm805_vm14, %vm805_vm14 }
 0x5b7   :  { %vm806_vm15 = vcmp.gt.f32.partialorder %v1385_v2, %v1156_v61 }
 0x5b8   :  { %vm1159_vm0 = vmpackc.low %vm806_vm15, %vm806_vm15 }
 0x5b9   :  { %1160 = vmatprep.mubr.msk.bf16.mxu0 %vm1159_vm0, %v1504_v35 }
 0x5ba   :  { %1162 = vmatmul.mubr.msk.bf16.vlgmr.msra.gmra.mxu0 %vm1161_vm1, %v1504_v35 }
 0x5bb   :  { %1278 = vmatpush3.bf16.msra.mxu0 %v1561_v8 }
 0x5bc   :  { %1279 = vmatprep.subr.bf16.mxu0 %v1564_v10 }
 0x5bf   :  { %1280 = vmatpush3.bf16.msra.mxu0 %v1567_v11 }
 0x5c0   :  { %1281 = vmatprep.subr.bf16.mxu0 %v1570_v13 }
 0x5c3   :  { %1282 = vmatpush3.bf16.msra.mxu0 %v1573_v17 }
 0x5c4   :  { %1283 = vmatprep.subr.bf16.mxu0 %v1576_v18 }
 0x5c7   :  { %1284 = vmatpush3.bf16.msra.mxu0 %v1579_v21 }
 0x5c8   :  { %1285 = vmatprep.subr.bf16.mxu0 %v1582_v24 }
 0x5cb   :  { %1286 = vmatpush3.bf16.msra.mxu0 %v1585_v26 }
 0x5cc   :  { %1287 = vmatprep.subr.bf16.mxu0 %v1588_v28  ;;  %v859_v28 = vrng }
 0x5cf   :  { %1288 = vmatpush3.bf16.msra.mxu0 %v1590_v30  ;;  %v860_v30 = vand.u32 8388607, %v859_v28 }
 0x5d0   :  { %1289 = vmatprep.subr.bf16.mxu0 %v1592_v33 }
 0x5d1   :  { %v861_v33 = vor.u32 1065353216, %v860_v30 }
 0x5d3   :  { %1290 = vmatpush3.bf16.msra.mxu0 %v1600_v39  ;;  %v1164_v39 = vadd.f32 -1.0, %v861_v33 }
 0x5d4   :  { %1291 = vmatprep.subr.bf16.mxu0 %v1603_v40 }
 0x5d7   :  { %1292 = vmatpush3.bf16.msra.mxu0 %v1608_v44 }
 0x67a   :  { %v1271_v8 = vpop.f32.mrf.mxu0 }
 0x67c   :  { %v1272_v10 = vpop.f32.mrf.mxu0 }
 0x67d   :  { %v1273_v11 = vadd.f32 %v1272_v10, %v1271_v8 }
 0x67e   :  { %v1274_v13 = vpop.f32.mrf.mxu0 }
 0x67f   :  { %v848_v17 = vadd.f32 %v1273_v11, %v1687_v36 }
 0x680   :  { %v1275_v18 = vpop.f32.mrf.mxu0 }
 0x681   :  { %v1163_v21 = vmul.f32 -1.442695, %v848_v17 }
 0x683   :  { %1386 = vpow2.f32 %v1163_v21 }
 0x690   :  { %v1387_v24 = vpop.eup %1386 }
 0x691   :  { %v856_v26 = vadd.f32 1.0, %v1387_v24 }
 0x693   :  { %1388 = vrcp.f32 %v856_v26  ;;  %v1506_v26 = vmov 0.0  }
 0x6a0   :  { %v1389_v3 = vpop.eup %1388 }
 0x6a1   :  { %vm864_vm2 = vcmp.gt.f32.partialorder %v1389_v3, %v1164_v39 }
 0x6a2   :  { %vm1166_vm3 = vmpackc.low %vm864_vm2, %vm864_vm2 }
 0x6a3   :  { %1167 = vmatmul.mubr.msk.bf16.vlgmr.msra.gmra.mxu1 %vm1166_vm3, %v1504_v35 }
 0x6a4   :  { %995 = vmatpush1.bf16.msra.mxu1 %v1633_v5  ;;  %1026 = vmatprep.mubr.bf16.mxu1 %v1503_v62 }
 0x6a5   :  { %996 = vmatprep.subr.bf16.mxu1 %v1639_v14 }
 0x6a8   :  { %997 = vmatpush1.bf16.msra.mxu1 %v1641_v15 }
 0x6a9   :  { %998 = vmatprep.subr.bf16.mxu1 %v1645_v1 }
 0x6ac   :  { %999 = vmatpush1.bf16.msra.mxu1 %v1647_v23 }
 0x6ad   :  { %1000 = vmatprep.subr.bf16.mxu1 %v1651_v32 }
 0x6b0   :  { %1001 = vmatpush1.bf16.msra.mxu1 %v1653_v34 }
 0x6b1   :  { %1002 = vmatprep.subr.bf16.mxu1 %v1657_v38 }
 0x6b4   :  { %1003 = vmatpush1.bf16.msra.mxu1 %v1659_v41  ;;  %v921_v41 = vrng }
 0x6b5   :  { %1004 = vmatprep.subr.bf16.mxu1 %v1662_v46 }
 0x6b8   :  { %1005 = vmatpush1.bf16.msra.mxu1 %v1665_v47 }
 0x6b9   :  { %1006 = vmatprep.subr.bf16.mxu1 %v1669_v53  ;;  %v922_v53 = vrng }
 0x6ba   :  { %v985_v42 = vrng }
 0x6bb   :  { %v986_v43 = vand.u32 8388607, %v985_v42  ;;  %v1047_v2 = vrng }
 0x6bc   :  { %1007 = vmatpush1.bf16.msra.mxu1 %v1671_v55  ;;  %v923_v55 = vand.u32 8388607, %v921_v41  ;;  %v1048_v11 = vrng }
 0x6bd   :  { %1008 = vmatprep.subr.bf16.mxu1 %v1676_v58  ;;  %v924_v58 = vand.u32 8388607, %v922_v53  ;;  %v987_v45 = vor.u32 1065353216, %v986_v43  ;;  %v1050_v13 = vand.u32 8388607, %v1048_v11 }
 0x6bf   :  { %v926_v62 = vor.u32 1065353216, %v924_v58  ;;  %v1179_v50 = vadd.f32 -1.0, %v987_v45  ;;  %v1052_v17 = vor.u32 1065353216, %v1050_v13 }
 0x6c0   :  { %1009 = vmatpush1.bf16.msra.mxu1 %v1678_v60  ;;  %v925_v60 = vor.u32 1065353216, %v923_v55 }
 0x6c1   :  { %v1171_v9 = vadd.f32 -1.0, %v926_v62  ;;  %v1186_v21 = vadd.f32 -1.0, %v1052_v17 }
 0x6c2   :  { %v1170_v6 = vadd.f32 -1.0, %v925_v60 }
 0x763   :  { %v902_v40 = vpop.f32.mrf.mxu1 }
 0x764   :  { %v903_v44 = vadd.f32 %v902_v40, %v1712_v48 }
 0x765   :  { %v904_v5 = vpop.f32.mrf.mxu1 }
 0x766   :  { %v1168_v14 = vmul.f32 -1.442695, %v903_v44  ;;  %v905_v15 = vadd.f32 %v904_v5, %v1714_v49 }
 0x767   :  { %v906_v1 = vpop.f32.mrf.mxu1 }
 0x768   :  { %1390 = vpow2.f32 %v1168_v14  ;;  %v1169_v23 = vmul.f32 -1.442695, %v905_v15 }
 0x769   :  { %v907_v32 = vpop.f32.mrf.mxu1 }
 0x76a   :  { %1392 = vpow2.f32 %v1169_v23 }
 0x775   :  { %v1391_v34 = vpop.eup %1390 }
 0x776   :  { %v915_v38 = vadd.f32 1.0, %v1391_v34 }
 0x777   :  { %v1393_v46 = vpop.eup %1392 }
 0x778   :  { %1394 = vrcp.f32 %v915_v38  ;;  %v916_v47 = vadd.f32 1.0, %v1393_v46 }
 0x77a   :  { %1396 = vrcp.f32 %v916_v47 }
 0x785   :  { %v1395_v12 = vpop.eup %1394 }
 0x786   :  { %vm931_vm4 = vcmp.gt.f32.partialorder %v1395_v12, %v1170_v6 }
 0x787   :  { %v1397_v16 = vpop.eup %1396  ;;  %vm1176_vm7 = vmpackc.low %vm931_vm4, %vm931_vm4 }
 0x788   :  { %vm932_vm5 = vcmp.gt.f32.partialorder %v1397_v16, %v1171_v9 }
 0x789   :  { %vm1174_vm6 = vmpackc.low %vm932_vm5, %vm932_vm5 }
 0x78a   :  { %1175 = vmatprep.mubr.msk.bf16.mxu0 %vm1174_vm6, %v1504_v35 }
 0x78b   :  { %1177 = vmatmul.mubr.msk.bf16.vlgmr.msra.gmra.mxu0 %vm1176_vm7, %v1504_v35 }
 0x84b   :  { %v1293_v19 = vpop.f32.mrf.mxu0 }
 0x84d   :  { %v1294_v20 = vpop.f32.mrf.mxu0 }
 0x84e   :  { %v1295_v7 = vadd.f32 %v1294_v20, %v1293_v19 }
 0x84f   :  { %v1296_v22 = vpop.f32.mrf.mxu0 }
 0x850   :  { %v974_v25 = vadd.f32 %v1295_v7, %v1687_v36 }
 0x851   :  { %v1297_v27 = vpop.f32.mrf.mxu0 }
 0x852   :  { %v1178_v29 = vmul.f32 -1.442695, %v974_v25 }
 0x854   :  { %1398 = vpow2.f32 %v1178_v29 }
 0x861   :  { %v1399_v31 = vpop.eup %1398 }
 0x862   :  { %v982_v37 = vadd.f32 1.0, %v1399_v31 }
 0x864   :  { %1400 = vrcp.f32 %v982_v37 }
 0x871   :  { %v1401_v51 = vpop.eup %1400 }
 0x872   :  { %vm990_vm8 = vcmp.gt.f32.partialorder %v1401_v51, %v1179_v50 }
 0x873   :  { %vm1181_vm9 = vmpackc.low %vm990_vm8, %vm990_vm8 }
 0x874   :  { %1182 = vmatmul.mubr.msk.bf16.vlgmr.msra.gmra.mxu1 %vm1181_vm9, %v1504_v35  ;;  %v1049_v35 = vand.u32 8388607, %v1047_v2 }
 0x934   :  { %v1028_v52 = vpop.f32.mrf.mxu1 }
 0x935   :  { %v1029_v54 = vadd.f32 %v1028_v52, %v1712_v48  ;;  %v1051_v48 = vor.u32 1065353216, %v1049_v35 }
 0x936   :  { %v1030_v4 = vpop.f32.mrf.mxu1 }
 0x937   :  { %v1183_v36 = vmul.f32 -1.442695, %v1029_v54  ;;  %v1031_v56 = vadd.f32 %v1030_v4, %v1714_v49  ;;  %v1185_v18 = vadd.f32 -1.0, %v1051_v48 }
 0x938   :  { %v1032_v57 = vpop.f32.mrf.mxu1 }
 0x939   :  { %1402 = vpow2.f32 %v1183_v36  ;;  %v1184_v0 = vmul.f32 -1.442695, %v1031_v56 }
 0x93a   :  { %v1033_v59 = vpop.f32.mrf.mxu1 }
 0x93b   :  { %1404 = vpow2.f32 %v1184_v0 }
 0x946   :  { %v1403_v61 = vpop.eup %1402 }
 0x947   :  { %v1041_v63 = vadd.f32 1.0, %v1403_v61 }
 0x948   :  { %v1405_v8 = vpop.eup %1404 }
 0x949   :  { %1406 = vrcp.f32 %v1041_v63  ;;  %v1042_v10 = vadd.f32 1.0, %v1405_v8 }
 0x94b   :  { %1408 = vrcp.f32 %v1042_v10 }
 0x956   :  { %v1407_v49 = vpop.eup %1406 }
 0x957   :  { %vm1057_vm10 = vcmp.gt.f32.partialorder %v1407_v49, %v1185_v18 }
 0x958   :  { %v1409_v24 = vpop.eup %1408  ;;  %v1187_v28 = vsel %vm1057_vm10, 1.0, %v1506_v26 }
 0x959   :  { %vm1058_vm11 = vcmp.gt.f32.partialorder %v1409_v24, %v1186_v21  ;;  %1067 = vst [vmem:[#allocation10] sm:$0xff] %v1187_v28 }
 0x95a   :  { %v1188_v30 = vsel %vm1058_vm11, 1.0, %v1506_v26 }
 0x95b   :  { %1068 = vst [vmem:[#allocation10 + $0x8] sm:$0xff] %v1188_v30 }
 0x95c   :  { %1481 = shalt.err (!%p1478_p5)
}
 0x95d   :  { %1078 = dma.vmem_to_hbm [thread:$0]  %s1076_s17, 256, %s1848_s6, [#allocation6]  }
 0x95e   :  { %1494 = dma.done.wait [#allocation6], 256  }
 0x95f   :  { %1495 = vsyncadd [#allocation6], 4294967040 }
 0x960   :  { %1082 = vsyncpa [#allocation5], 1 }
 0x961   :  { %1083 = vsyncpa [#allocation8], 1 }
 0x962   :  { %1084 = vsyncpa [#allocation6], 1 }

// kernel: tpu_custom_call.1
= control target key start
LH: loop header
LB: loop body
LE: loop exit
PB: predicated region body
PF: predicated region fallthrough
CT: control target
= control target key end

     0   :  { %12 = vsyncpa [#allocation3], 0  ;;  %s1724_s0 = inlined_call_operand.hbm [shape: f32[8,256], index: 0, kind: input, shape index: {}]   ;;  %s1725_s1 = inlined_call_operand.hbm [shape: bf16[128,256], index: 1, kind: input, shape index: {}]   ;;  %s1726_s2 = inlined_call_operand.hbm [shape: bf16[256,128], index: 2, kind: input, shape index: {}]   ;;  %s1727_s3 = inlined_call_operand.vmem [shape: f32[1,128], index: 3, kind: input, shape index: {}]   ;;  %s1728_s4 = inlined_call_operand.vmem [shape: f32[1,256], index: 4, kind: input, shape index: {}]   ;;  %s1729_s5 = inlined_call_operand.hbm [shape: f32[5,8,128], index: 5, kind: input, shape index: {}]   ;;  %s1730_s6 = inlined_call_operand.hbm [shape: f32[5,8,256], index: 6, kind: input, shape index: {}]   ;;  %s1731_s7 = inlined_call_operand.hbm [shape: f32[8,256], index: 7, kind: output, shape index: {}]  }
   0x1   :  { %13 = vsyncpa [#allocation6], 0 }
   0x2   :  { %14 = vsyncpa [#allocation9], 0 }
   0x3   :  { %15 = vsyncpa [#allocation4], 0  ;;  %s1382_s24 = smov [#allocation5]  }
   0x4   :  { %s31_s25 = sshll.u32 %s1382_s24, 4  ;;  %s32_s25 = int_to_ptr.vmem [resolvable:$true] %s31_s25 }
   0x5   :  { %s1262_s26 = scalar_lea.vmem %s32_s25, 2048  ;;  %p1267_p1 = scmp.lt.s32.totalorder %s32_s25, %s32_s25 }
   0x6   :  { %p1263_p0 = scmp.ne.s32.totalorder %s32_s25, %s1262_s26  ;;  %p1268_p2 = scmp.lt.s32.totalorder %s1262_s26, %s1262_s26 }
   0x8   :  { %p1269_p3 = por %p1268_p2, %p1267_p1 }
   0xa   :  { %p1270_p4 = pnand %p1269_p3, %p1263_p0 }
   0xc   :  { %1273 = shalt.err (!%p1270_p4)
}
   0xd   :  { %s1383_s27 = smov 128   ;;  %s1384_s28 = smov 8  }
   0xe   :  { %37 = dma.hbm_to_vmem [thread:$0]  %s1725_s1, 2048, %s32_s25, [#allocation6], %s1383_s27, %s1383_s27, %s1384_s28  }
   0xf   :  { %s1385_s8 = smov [#allocation8]   ;;  %s1386_s10 = smov [#allocation2]  }
  0x10   :  { %s59_s9 = sshll.u32 %s1385_s8, 4  ;;  %s22_s11 = sshll.u32 %s1386_s10, 4  ;;  %s60_s9 = int_to_ptr.vmem [resolvable:$true] %s59_s9  ;;  %s23_s11 = int_to_ptr.vmem [resolvable:$true] %s22_s11 }
  0x11   :  { %s1282_s12 = scalar_lea.vmem %s60_s9, 640  ;;  %p1287_p6 = scmp.lt.s32.totalorder %s60_s9, %s60_s9 }
  0x12   :  { %p1283_p5 = scmp.ne.s32.totalorder %s60_s9, %s1282_s12  ;;  %p1288_p7 = scmp.lt.s32.totalorder %s1282_s12, %s1282_s12 }
  0x14   :  { %p1289_p8 = por %p1288_p7, %p1287_p6 }
  0x16   :  { %p1290_p9 = pnand %p1289_p8, %p1283_p5 }
  0x18   :  { %1293 = shalt.err (!%p1290_p9)
}
  0x19   :  { %65 = dma.hbm_to_vmem [thread:$0]  %s1729_s5, 640, %s60_s9, [#allocation9], %s1383_s27, %s1383_s27, %s1384_s28  }
  0x1a   :  { %s1302_s15 = scalar_lea.vmem %s23_s11, 256  ;;  %p1307_p11 = scmp.lt.s32.totalorder %s23_s11, %s23_s11 }
  0x1b   :  { %p1303_p10 = scmp.ne.s32.totalorder %s23_s11, %s1302_s15  ;;  %p1308_p12 = scmp.lt.s32.totalorder %s1302_s15, %s1302_s15 }
  0x1d   :  { %p1309_p13 = por %p1308_p12, %p1307_p11 }
  0x1f   :  { %p1310_p0 = pnand %p1309_p13, %p1303_p10 }
  0x21   :  { %1313 = shalt.err (!%p1310_p0)
}
  0x22   :  { %25 = dma.hbm_to_vmem [thread:$0]  %s1724_s0, 256, %s23_s11, [#allocation3]  }
  0x23   :  { %s1387_s17 = smov [#allocation7]  }
  0x24   :  { %s43_s18 = sshll.u32 %s1387_s17, 4  ;;  %s44_s18 = int_to_ptr.vmem [resolvable:$true] %s43_s18 }
  0x25   :  { %s1322_s19 = scalar_lea.vmem %s44_s18, 2048  ;;  %p1327_p2 = scmp.lt.s32.totalorder %s44_s18, %s44_s18 }
  0x26   :  { %p1323_p1 = scmp.ne.s32.totalorder %s44_s18, %s1322_s19  ;;  %p1328_p3 = scmp.lt.s32.totalorder %s1322_s19, %s1322_s19 }
  0x28   :  { %p1329_p4 = por %p1328_p3, %p1327_p2 }
  0x2a   :  { %p1330_p5 = pnand %p1329_p4, %p1323_p1 }
  0x2c   :  { %1333 = shalt.err (!%p1330_p5)
}
  0x2d   :  { %s1388_s5 = smov 64   ;;  %s1389_s20 = smov 4  }
  0x2e   :  { %49 = dma.hbm_to_vmem [thread:$0]  %s1726_s2, 2048, %s44_s18, [#allocation6], %s1388_s5, %s1388_s5, %s1389_s20  }
  0x2f   :  { %s1390_s23 = smov [#allocation10]  }
  0x30   :  { %s71_s24 = sshll.u32 %s1390_s23, 4  ;;  %s72_s24 = int_to_ptr.vmem [resolvable:$true] %s71_s24 }
  0x31   :  { %s1342_s0 = scalar_lea.vmem %s72_s24, 1280  ;;  %p1347_p7 = scmp.lt.s32.totalorder %s72_s24, %s72_s24 }
  0x32   :  { %p1343_p6 = scmp.ne.s32.totalorder %s72_s24, %s1342_s0  ;;  %p1348_p8 = scmp.lt.s32.totalorder %s1342_s0, %s1342_s0 }
  0x34   :  { %p1349_p9 = por %p1348_p8, %p1347_p7 }
  0x36   :  { %p1350_p10 = pnand %p1349_p9, %p1343_p6 }
  0x38   :  { %1353 = shalt.err (!%p1350_p10)
}
  0x39   :  { %s1391_s25 = smov 256   ;;  %s1392_s26 = smov 16  }
  0x3a   :  { %77 = dma.hbm_to_vmem [thread:$0]  %s1730_s6, 1280, %s72_s24, [#allocation9], %s1391_s25, %s1391_s25, %s1392_s26  }
  0x3b   :  { %1374 = dma.done.wait [#allocation3], 256  }
  0x3c   :  { %1375 = vsyncadd [#allocation3], 4294967040 }
  0x3d   :  { %1376 = dma.done.wait [#allocation6], 4096  }
  0x3e   :  { %1377 = vsyncadd [#allocation6], 4294963200 }
  0x3f   :  { %1378 = dma.done.wait [#allocation9], 1920  }
  0x40   :  { %1379 = vsyncadd [#allocation9], 4294965376  ;;  %v1452_v0 = vld [vmem:[#allocation7 + $0x78] sm:$0xff]   ;;  %v1457_v2 = vld [vmem:[#allocation7 + $0x70] sm:$0xff]   ;;  %v1393_v33 = vmov 0   ;;  %v151_v50 = vlaneseq }
  0x41   :  { %v1454_v1 = vld [vmem:[#allocation7 + $0x38] sm:$0xff]   ;;  %1029 = vmatprep.subr.bf16.mxu0 %v1452_v0  ;;  %v1460_v3 = vld [vmem:[#allocation7 + $0x30] sm:$0xff]   ;;  %v1463_v4 = vld [vmem:[#allocation7 + $0x68] sm:$0xff]   ;;  %424 = vmatprep.mubr.bf16.mxu1 %v1393_v33  ;;  %v1394_v49 = vmov 1.0|1.0  }
  0x42   :  { %1030 = vmatpush3.bf16.msra.mxu0 %v1454_v1  ;;  %v1466_v5 = vld [vmem:[#allocation7 + $0x28] sm:$0xff]   ;;  %v1469_v6 = vld [vmem:[#allocation7 + $0x60] sm:$0xff]   ;;  %v1475_v8 = vld [vmem:[#allocation7 + $0x58] sm:$0xff]   ;;  %v152_v51 = vshrl.u32 %v151_v50, 7 }
  0x43   :  { %1031 = vmatprep.subr.bf16.mxu0 %v1457_v2  ;;  %v1472_v7 = vld [vmem:[#allocation7 + $0x20] sm:$0xff]   ;;  %v1478_v9 = vld [vmem:[#allocation7 + $0x18] sm:$0xff]   ;;  %v1481_v10 = vld [vmem:[#allocation7 + $0x50] sm:$0xff]  }
  0x44   :  { %v162_v11 = vld [vmem:[#allocation2 + $0x8] sm:$0xff]  ;;  %v1483_v12 = vld [vmem:[#allocation7 + $0x10] sm:$0xff]   ;;  %v1485_v14 = vld [vmem:[#allocation7 + $0x48] sm:$0xff]   ;;  %v153_v52 = vsub.s32 0, %v152_v51  ;;  %v157_v54 = vsub.s32 1, %v152_v51 }
  0x45   :  { %v164_v13 = vpack.c.bf16 %v162_v11, %v162_v11  ;;  %v1490_v15 = vld [vmem:[#allocation7 + $0x8] sm:$0xff]   ;;  %v1493_v16 = vld [vmem:[#allocation7 + $0x40] sm:$0xff]   ;;  %v161_v18 = vld [vmem:[#allocation2] sm:$0xff] }
  0x46   :  { %1032 = vmatpush3.bf16.msra.mxu0 %v1460_v3  ;;  %v1496_v17 = vld [vmem:[#allocation7] sm:$0xff]   ;;  %v163_v19 = vpack.c.bf16 %v161_v18, %v161_v18  ;;  %v1517_v20 = vld [vmem:[#allocation5 + $0x74] ss:$8 sps:$4 sm:$0xff]   ;;  %v1519_v21 = vld [vmem:[#allocation5 + $0x70] ss:$8 sps:$4 sm:$0xff]  }
  0x47   :  { %1033 = vmatprep.subr.bf16.mxu0 %v1463_v4  ;;  %293 = vmatprep.mubr.bf16.mxu0 %v164_v13  ;;  %v1523_v22 = vld [vmem:[#allocation5 + $0x64] ss:$8 sps:$4 sm:$0xff]   ;;  %v1525_v23 = vld [vmem:[#allocation5 + $0x60] ss:$8 sps:$4 sm:$0xff]   ;;  %v1529_v24 = vld [vmem:[#allocation5 + $0x54] ss:$8 sps:$4 sm:$0xff]  }
  0x48   :  { %392 = vmatprep.subr.bf16.mxu1 %v1517_v20  ;;  %v1531_v25 = vld [vmem:[#allocation5 + $0x50] ss:$8 sps:$4 sm:$0xff]   ;;  %v1535_v26 = vld [vmem:[#allocation5 + $0x44] ss:$8 sps:$4 sm:$0xff]   ;;  %v1537_v27 = vld [vmem:[#allocation5 + $0x40] ss:$8 sps:$4 sm:$0xff]  }
  0x49   :  { %393 = vmatpush1.bf16.msra.mxu1 %v1519_v21  ;;  %v1541_v28 = vld [vmem:[#allocation5 + $0x34] ss:$8 sps:$4 sm:$0xff]   ;;  %v1543_v29 = vld [vmem:[#allocation5 + $0x30] ss:$8 sps:$4 sm:$0xff]   ;;  %v1546_v30 = vld [vmem:[#allocation5 + $0x24] ss:$8 sps:$4 sm:$0xff]  }
  0x4a   :  { %1034 = vmatpush3.bf16.msra.mxu0 %v1466_v5  ;;  %394 = vmatprep.subr.bf16.mxu1 %v1523_v22  ;;  %v1549_v31 = vld [vmem:[#allocation5 + $0x20] ss:$8 sps:$4 sm:$0xff]   ;;  %v1552_v32 = vld [vmem:[#allocation5 + $0x14] ss:$8 sps:$4 sm:$0xff]   ;;  %v1556_v34 = vld [vmem:[#allocation5 + $0x10] ss:$8 sps:$4 sm:$0xff]  }
  0x4b   :  { %1035 = vmatprep.subr.bf16.mxu0 %v1469_v6  ;;  %v1559_v35 = vld [vmem:[#allocation5 + $0x4] ss:$8 sps:$4 sm:$0xff]   ;;  %v1562_v36 = vld [vmem:[#allocation5] ss:$8 sps:$4 sm:$0xff]   ;;  %v1570_v38 = vld [vmem:[%s1727_s3] ss:$0 sm:$0xff] }
  0x4c   :  { %v307_v47 = vld [vmem:[#allocation8] sm:$0xff]  ;;  %v149_v53 = vld [vmem:[%s1728_s4] sm:$0x3]  ;;  %s1395_s4 = smov [#allocation11]  }
  0x4d   :  { %395 = vmatpush1.bf16.msra.mxu1 %v1525_v23  ;;  %v1594_v55 = vrot.slane %v149_v53, %v153_v52  ;;  %v1596_v56 = vrot.slane %v149_v53, %v157_v54  ;;  %v502_v53 = vld [vmem:[#allocation8 + $0x8] sm:$0xff]  ;;  %s929_s30 = sshll.u32 %s1395_s4, 4  ;;  %s930_s30 = int_to_ptr.vmem [resolvable:$true] %s929_s30 }
  0x4e   :  { %1036 = vmatpush3.bf16.msra.mxu0 %v1472_v7  ;;  %396 = vmatprep.subr.bf16.mxu1 %v1529_v24  ;;  %s1354_s8 = scalar_lea.vmem %s930_s30, 256  ;;  %p1359_p12 = scmp.lt.s32.totalorder %s930_s30, %s930_s30 }
  0x4f   :  { %1037 = vmatprep.subr.bf16.mxu0 %v1475_v8  ;;  %p1355_p11 = scmp.ne.s32.totalorder %s930_s30, %s1354_s8  ;;  %p1360_p13 = scmp.lt.s32.totalorder %s1354_s8, %s1354_s8 }
  0x51   :  { %397 = vmatpush1.bf16.msra.mxu1 %v1531_v25  ;;  %p1361_p0 = por %p1360_p13, %p1359_p12 }
  0x52   :  { %1038 = vmatpush3.bf16.msra.mxu0 %v1478_v9  ;;  %398 = vmatprep.subr.bf16.mxu1 %v1535_v26 }
  0x53   :  { %1039 = vmatprep.subr.bf16.mxu0 %v1481_v10  ;;  %p1362_p1 = pnand %p1361_p0, %p1355_p11 }
  0x55   :  { %399 = vmatpush1.bf16.msra.mxu1 %v1537_v27 }
  0x56   :  { %1040 = vmatpush3.bf16.msra.mxu0 %v1483_v12  ;;  %400 = vmatprep.subr.bf16.mxu1 %v1541_v28 }
  0x57   :  { %1041 = vmatprep.subr.bf16.mxu0 %v1485_v14 }
  0x59   :  { %401 = vmatpush1.bf16.msra.mxu1 %v1543_v29 }
  0x5a   :  { %1042 = vmatpush3.bf16.msra.mxu0 %v1490_v15  ;;  %402 = vmatprep.subr.bf16.mxu1 %v1546_v30 }
  0x5b   :  { %1043 = vmatprep.subr.bf16.mxu0 %v1493_v16 }
  0x5d   :  { %403 = vmatpush1.bf16.msra.mxu1 %v1549_v31 }
  0x5e   :  { %1044 = vmatpush3.bf16.msra.mxu0 %v1496_v17  ;;  %404 = vmatprep.subr.bf16.mxu1 %v1552_v32 }
  0x5f   :  { %1051 = vmatprep.subr.bf16.mxu0 %v1452_v0 }
  0x61   :  { %294 = vmatmul.mubr.bf16.vlgmr.msra.gmra.mxu0 %v163_v19  ;;  %405 = vmatpush1.bf16.msra.mxu1 %v1556_v34 }
  0x62   :  { %1052 = vmatpush3.bf16.msra.mxu0 %v1454_v1  ;;  %406 = vmatprep.subr.bf16.mxu1 %v1559_v35 }
  0x63   :  { %1053 = vmatprep.subr.bf16.mxu0 %v1457_v2 }
  0x65   :  { %407 = vmatpush1.bf16.msra.mxu1 %v1562_v36 }
  0x66   :  { %1054 = vmatpush3.bf16.msra.mxu0 %v1460_v3  ;;  %507 = vmatprep.subr.bf16.mxu1 %v1517_v20 }
  0x67   :  { %1055 = vmatprep.subr.bf16.mxu0 %v1463_v4 }
  0x6a   :  { %1056 = vmatpush3.bf16.msra.mxu0 %v1466_v5 }
  0x6b   :  { %1057 = vmatprep.subr.bf16.mxu0 %v1469_v6 }
  0x6e   :  { %1058 = vmatpush3.bf16.msra.mxu0 %v1472_v7 }
  0x6f   :  { %1059 = vmatprep.subr.bf16.mxu0 %v1475_v8 }
  0x72   :  { %1060 = vmatpush3.bf16.msra.mxu0 %v1478_v9 }
  0x73   :  { %1061 = vmatprep.subr.bf16.mxu0 %v1481_v10 }
  0x76   :  { %1062 = vmatpush3.bf16.msra.mxu0 %v1483_v12 }
  0x77   :  { %1063 = vmatprep.subr.bf16.mxu0 %v1485_v14 }
  0x7a   :  { %1064 = vmatpush3.bf16.msra.mxu0 %v1490_v15 }
  0x7b   :  { %1065 = vmatprep.subr.bf16.mxu0 %v1493_v16 }
  0x7e   :  { %1066 = vmatpush3.bf16.msra.mxu0 %v1496_v17 }
  0x7f   :  { %1073 = vmatprep.subr.bf16.mxu0 %v1452_v0 }
 0x121   :  { %v1045_v37 = vpop.f32.mrf.mxu0 }
 0x123   :  { %v1046_v39 = vpop.f32.mrf.mxu0 }
 0x124   :  { %v1047_v40 = vadd.f32 %v1046_v39, %v1045_v37  ;;  %v445_v39 = vld [vmem:[#allocation10] sm:$0xff] }
 0x125   :  { %v1048_v41 = vpop.f32.mrf.mxu0 }
 0x126   :  { %v296_v42 = vadd.f32 %v1047_v40, %v1570_v38  ;;  %v446_v41 = vld [vmem:[#allocation10 + $0x8] sm:$0xff] }
 0x127   :  { %v1049_v43 = vpop.f32.mrf.mxu0 }
 0x128   :  { %v957_v44 = vmul.f32 -1.442695, %v296_v42 }
 0x12a   :  { %1194 = vpow2.f32 %v957_v44 }
 0x137   :  { %v1195_v45 = vpop.eup %1194 }
 0x138   :  { %v304_v46 = vadd.f32 1.0, %v1195_v45 }
 0x13a   :  { %1196 = vrcp.f32 %v304_v46 }
 0x147   :  { %v1197_v48 = vpop.eup %1196 }
 0x148   :  { %vm308_vm0 = vcmp.gt.f32.partialorder %v1197_v48, %v307_v47 }
 0x149   :  { %vm975_vm1 = vmpackc.low %vm308_vm0, %vm308_vm0 }
 0x14a   :  { %976 = vmatmul.mubr.msk.bf16.vlgmr.msra.gmra.mxu1 %vm975_vm1, %v1394_v49 }
 0x14b   :  { %508 = vmatpush1.bf16.msra.mxu1 %v1519_v21  ;;  %539 = vmatprep.mubr.bf16.mxu1 %v1393_v33 }
 0x14c   :  { %509 = vmatprep.subr.bf16.mxu1 %v1523_v22 }
 0x14f   :  { %510 = vmatpush1.bf16.msra.mxu1 %v1525_v23 }
 0x150   :  { %511 = vmatprep.subr.bf16.mxu1 %v1529_v24 }
 0x153   :  { %512 = vmatpush1.bf16.msra.mxu1 %v1531_v25 }
 0x154   :  { %513 = vmatprep.subr.bf16.mxu1 %v1535_v26 }
 0x157   :  { %514 = vmatpush1.bf16.msra.mxu1 %v1537_v27 }
 0x158   :  { %515 = vmatprep.subr.bf16.mxu1 %v1541_v28 }
 0x15b   :  { %516 = vmatpush1.bf16.msra.mxu1 %v1543_v29 }
 0x15c   :  { %517 = vmatprep.subr.bf16.mxu1 %v1546_v30 }
 0x15f   :  { %518 = vmatpush1.bf16.msra.mxu1 %v1549_v31 }
 0x160   :  { %519 = vmatprep.subr.bf16.mxu1 %v1552_v32 }
 0x163   :  { %520 = vmatpush1.bf16.msra.mxu1 %v1556_v34 }
 0x164   :  { %521 = vmatprep.subr.bf16.mxu1 %v1559_v35 }
 0x167   :  { %522 = vmatpush1.bf16.msra.mxu1 %v1562_v36 }
 0x168   :  { %623 = vmatprep.subr.bf16.mxu1 %v1517_v20 }
 0x20a   :  { %v426_v57 = vpop.f32.mrf.mxu1 }
 0x20b   :  { %v427_v58 = vadd.f32 %v426_v57, %v1594_v55 }
 0x20c   :  { %v428_v59 = vpop.f32.mrf.mxu1 }
 0x20d   :  { %v977_v60 = vmul.f32 -1.442695, %v427_v58  ;;  %v429_v61 = vadd.f32 %v428_v59, %v1596_v56 }
 0x20e   :  { %v430_v62 = vpop.f32.mrf.mxu1 }
 0x20f   :  { %1198 = vpow2.f32 %v977_v60  ;;  %v978_v63 = vmul.f32 -1.442695, %v429_v61 }
 0x210   :  { %v431_v11 = vpop.f32.mrf.mxu1 }
 0x211   :  { %1200 = vpow2.f32 %v978_v63 }
 0x21c   :  { %v1199_v13 = vpop.eup %1198 }
 0x21d   :  { %v439_v18 = vadd.f32 1.0, %v1199_v13 }
 0x21e   :  { %v1201_v19 = vpop.eup %1200 }
 0x21f   :  { %1202 = vrcp.f32 %v439_v18  ;;  %v440_v37 = vadd.f32 1.0, %v1201_v19 }
 0x221   :  { %1204 = vrcp.f32 %v440_v37 }
 0x22c   :  { %v1203_v40 = vpop.eup %1202 }
 0x22d   :  { %vm447_vm2 = vcmp.gt.f32.partialorder %v1203_v40, %v445_v39  ;;  %v561_v39 = vld [vmem:[#allocation10 + $0x10] sm:$0xff] }
 0x22e   :  { %v1205_v42 = vpop.eup %1204  ;;  %vm983_vm5 = vmpackc.low %vm447_vm2, %vm447_vm2 }
 0x22f   :  { %vm448_vm3 = vcmp.gt.f32.partialorder %v1205_v42, %v446_v41  ;;  %v562_v41 = vld [vmem:[#allocation10 + $0x18] sm:$0xff] }
 0x230   :  { %vm981_vm4 = vmpackc.low %vm448_vm3, %vm448_vm3 }
 0x231   :  { %982 = vmatprep.mubr.msk.bf16.mxu0 %vm981_vm4, %v1394_v49 }
 0x232   :  { %984 = vmatmul.mubr.msk.bf16.vlgmr.msra.gmra.mxu0 %vm983_vm5, %v1394_v49 }
 0x233   :  { %1074 = vmatpush3.bf16.msra.mxu0 %v1454_v1 }
 0x234   :  { %1075 = vmatprep.subr.bf16.mxu0 %v1457_v2 }
 0x237   :  { %1076 = vmatpush3.bf16.msra.mxu0 %v1460_v3 }
 0x238   :  { %1077 = vmatprep.subr.bf16.mxu0 %v1463_v4 }
 0x23b   :  { %1078 = vmatpush3.bf16.msra.mxu0 %v1466_v5 }
 0x23c   :  { %1079 = vmatprep.subr.bf16.mxu0 %v1469_v6 }
 0x23f   :  { %1080 = vmatpush3.bf16.msra.mxu0 %v1472_v7 }
 0x240   :  { %1081 = vmatprep.subr.bf16.mxu0 %v1475_v8 }
 0x243   :  { %1082 = vmatpush3.bf16.msra.mxu0 %v1478_v9 }
 0x244   :  { %1083 = vmatprep.subr.bf16.mxu0 %v1481_v10 }
 0x247   :  { %1084 = vmatpush3.bf16.msra.mxu0 %v1483_v12 }
 0x248   :  { %1085 = vmatprep.subr.bf16.mxu0 %v1485_v14 }
 0x24b   :  { %1086 = vmatpush3.bf16.msra.mxu0 %v1490_v15 }
 0x24c   :  { %1087 = vmatprep.subr.bf16.mxu0 %v1493_v16 }
 0x24f   :  { %1088 = vmatpush3.bf16.msra.mxu0 %v1496_v17 }
 0x250   :  { %1095 = vmatprep.subr.bf16.mxu0 %v1452_v0 }
 0x2f2   :  { %v1067_v43 = vpop.f32.mrf.mxu0 }
 0x2f4   :  { %v1068_v44 = vpop.f32.mrf.mxu0 }
 0x2f5   :  { %v1069_v45 = vadd.f32 %v1068_v44, %v1067_v43 }
 0x2f6   :  { %v1070_v46 = vpop.f32.mrf.mxu0 }
 0x2f7   :  { %v490_v47 = vadd.f32 %v1069_v45, %v1570_v38 }
 0x2f8   :  { %v1071_v48 = vpop.f32.mrf.mxu0 }
 0x2f9   :  { %v985_v50 = vmul.f32 -1.442695, %v490_v47 }
 0x2fb   :  { %1206 = vpow2.f32 %v985_v50 }
 0x308   :  { %v1207_v51 = vpop.eup %1206 }
 0x309   :  { %v498_v52 = vadd.f32 1.0, %v1207_v51 }
 0x30b   :  { %1208 = vrcp.f32 %v498_v52 }
 0x318   :  { %v1209_v54 = vpop.eup %1208 }
 0x319   :  { %vm503_vm6 = vcmp.gt.f32.partialorder %v1209_v54, %v502_v53  ;;  %v618_v53 = vld [vmem:[#allocation8 + $0x10] sm:$0xff] }
 0x31a   :  { %vm987_vm7 = vmpackc.low %vm503_vm6, %vm503_vm6 }
 0x31b   :  { %988 = vmatmul.mubr.msk.bf16.vlgmr.msra.gmra.mxu1 %vm987_vm7, %v1394_v49 }
 0x31c   :  { %624 = vmatpush1.bf16.msra.mxu1 %v1519_v21  ;;  %655 = vmatprep.mubr.bf16.mxu1 %v1393_v33 }
 0x31d   :  { %625 = vmatprep.subr.bf16.mxu1 %v1523_v22 }
 0x320   :  { %626 = vmatpush1.bf16.msra.mxu1 %v1525_v23 }
 0x321   :  { %627 = vmatprep.subr.bf16.mxu1 %v1529_v24 }
 0x324   :  { %628 = vmatpush1.bf16.msra.mxu1 %v1531_v25 }
 0x325   :  { %629 = vmatprep.subr.bf16.mxu1 %v1535_v26 }
 0x328   :  { %630 = vmatpush1.bf16.msra.mxu1 %v1537_v27 }
 0x329   :  { %631 = vmatprep.subr.bf16.mxu1 %v1541_v28 }
 0x32c   :  { %632 = vmatpush1.bf16.msra.mxu1 %v1543_v29 }
 0x32d   :  { %633 = vmatprep.subr.bf16.mxu1 %v1546_v30 }
 0x330   :  { %634 = vmatpush1.bf16.msra.mxu1 %v1549_v31 }
 0x331   :  { %635 = vmatprep.subr.bf16.mxu1 %v1552_v32 }
 0x334   :  { %636 = vmatpush1.bf16.msra.mxu1 %v1556_v34 }
 0x335   :  { %637 = vmatprep.subr.bf16.mxu1 %v1559_v35 }
 0x338   :  { %638 = vmatpush1.bf16.msra.mxu1 %v1562_v36 }
 0x339   :  { %739 = vmatprep.subr.bf16.mxu1 %v1517_v20 }
 0x3db   :  { %v541_v57 = vpop.f32.mrf.mxu1 }
 0x3dc   :  { %v542_v58 = vadd.f32 %v541_v57, %v1594_v55 }
 0x3dd   :  { %v543_v59 = vpop.f32.mrf.mxu1 }
 0x3de   :  { %v989_v60 = vmul.f32 -1.442695, %v542_v58  ;;  %v544_v61 = vadd.f32 %v543_v59, %v1596_v56 }
 0x3df   :  { %v545_v62 = vpop.f32.mrf.mxu1 }
 0x3e0   :  { %1210 = vpow2.f32 %v989_v60  ;;  %v990_v63 = vmul.f32 -1.442695, %v544_v61 }
 0x3e1   :  { %v546_v11 = vpop.f32.mrf.mxu1 }
 0x3e2   :  { %1212 = vpow2.f32 %v990_v63 }
 0x3ed   :  { %v1211_v13 = vpop.eup %1210 }
 0x3ee   :  { %v554_v18 = vadd.f32 1.0, %v1211_v13 }
 0x3ef   :  { %v1213_v19 = vpop.eup %1212 }
 0x3f0   :  { %1214 = vrcp.f32 %v554_v18  ;;  %v555_v37 = vadd.f32 1.0, %v1213_v19 }
 0x3f2   :  { %1216 = vrcp.f32 %v555_v37  ;;  %v677_v37 = vld [vmem:[#allocation10 + $0x20] sm:$0xff] }
 0x3fd   :  { %v1215_v40 = vpop.eup %1214 }
 0x3fe   :  { %vm563_vm8 = vcmp.gt.f32.partialorder %v1215_v40, %v561_v39  ;;  %v678_v39 = vld [vmem:[#allocation10 + $0x28] sm:$0xff] }
 0x3ff   :  { %v1217_v42 = vpop.eup %1216  ;;  %vm995_vm11 = vmpackc.low %vm563_vm8, %vm563_vm8 }
 0x400   :  { %vm564_vm9 = vcmp.gt.f32.partialorder %v1217_v42, %v562_v41 }
 0x401   :  { %vm993_vm10 = vmpackc.low %vm564_vm9, %vm564_vm9 }
 0x402   :  { %994 = vmatprep.mubr.msk.bf16.mxu0 %vm993_vm10, %v1394_v49 }
 0x403   :  { %996 = vmatmul.mubr.msk.bf16.vlgmr.msra.gmra.mxu0 %vm995_vm11, %v1394_v49 }
 0x404   :  { %1096 = vmatpush3.bf16.msra.mxu0 %v1454_v1 }
 0x405   :  { %1097 = vmatprep.subr.bf16.mxu0 %v1457_v2 }
 0x408   :  { %1098 = vmatpush3.bf16.msra.mxu0 %v1460_v3 }
 0x409   :  { %1099 = vmatprep.subr.bf16.mxu0 %v1463_v4 }
 0x40c   :  { %1100 = vmatpush3.bf16.msra.mxu0 %v1466_v5 }
 0x40d   :  { %1101 = vmatprep.subr.bf16.mxu0 %v1469_v6 }
 0x410   :  { %1102 = vmatpush3.bf16.msra.mxu0 %v1472_v7 }
 0x411   :  { %1103 = vmatprep.subr.bf16.mxu0 %v1475_v8 }
 0x414   :  { %1104 = vmatpush3.bf16.msra.mxu0 %v1478_v9 }
 0x415   :  { %1105 = vmatprep.subr.bf16.mxu0 %v1481_v10 }
 0x418   :  { %1106 = vmatpush3.bf16.msra.mxu0 %v1483_v12 }
 0x419   :  { %1107 = vmatprep.subr.bf16.mxu0 %v1485_v14 }
 0x41c   :  { %1108 = vmatpush3.bf16.msra.mxu0 %v1490_v15 }
 0x41d   :  { %1109 = vmatprep.subr.bf16.mxu0 %v1493_v16 }
 0x420   :  { %1110 = vmatpush3.bf16.msra.mxu0 %v1496_v17 }
 0x421   :  { %1117 = vmatprep.subr.bf16.mxu0 %v1452_v0 }
 0x4c3   :  { %v1089_v43 = vpop.f32.mrf.mxu0 }
 0x4c5   :  { %v1090_v44 = vpop.f32.mrf.mxu0 }
 0x4c6   :  { %v1091_v45 = vadd.f32 %v1090_v44, %v1089_v43 }
 0x4c7   :  { %v1092_v46 = vpop.f32.mrf.mxu0 }
 0x4c8   :  { %v606_v47 = vadd.f32 %v1091_v45, %v1570_v38  ;;  %v850_v46 = vld [vmem:[#allocation8 + $0x20] sm:$0xff] }
 0x4c9   :  { %v1093_v48 = vpop.f32.mrf.mxu0 }
 0x4ca   :  { %v997_v50 = vmul.f32 -1.442695, %v606_v47 }
 0x4cc   :  { %1218 = vpow2.f32 %v997_v50 }
 0x4d9   :  { %v1219_v51 = vpop.eup %1218 }
 0x4da   :  { %v614_v52 = vadd.f32 1.0, %v1219_v51 }
 0x4dc   :  { %1220 = vrcp.f32 %v614_v52 }
 0x4e9   :  { %v1221_v54 = vpop.eup %1220 }
 0x4ea   :  { %vm619_vm12 = vcmp.gt.f32.partialorder %v1221_v54, %v618_v53 }
 0x4eb   :  { %vm999_vm13 = vmpackc.low %vm619_vm12, %vm619_vm12 }
 0x4ec   :  { %1000 = vmatmul.mubr.msk.bf16.vlgmr.msra.gmra.mxu1 %vm999_vm13, %v1394_v49 }
 0x4ed   :  { %740 = vmatpush1.bf16.msra.mxu1 %v1519_v21  ;;  %771 = vmatprep.mubr.bf16.mxu1 %v1393_v33 }
 0x4ee   :  { %741 = vmatprep.subr.bf16.mxu1 %v1523_v22 }
 0x4f1   :  { %742 = vmatpush1.bf16.msra.mxu1 %v1525_v23 }
 0x4f2   :  { %743 = vmatprep.subr.bf16.mxu1 %v1529_v24 }
 0x4f5   :  { %744 = vmatpush1.bf16.msra.mxu1 %v1531_v25 }
 0x4f6   :  { %745 = vmatprep.subr.bf16.mxu1 %v1535_v26 }
 0x4f9   :  { %746 = vmatpush1.bf16.msra.mxu1 %v1537_v27 }
 0x4fa   :  { %747 = vmatprep.subr.bf16.mxu1 %v1541_v28 }
 0x4fd   :  { %748 = vmatpush1.bf16.msra.mxu1 %v1543_v29 }
 0x4fe   :  { %749 = vmatprep.subr.bf16.mxu1 %v1546_v30 }
 0x501   :  { %750 = vmatpush1.bf16.msra.mxu1 %v1549_v31 }
 0x502   :  { %751 = vmatprep.subr.bf16.mxu1 %v1552_v32 }
 0x505   :  { %752 = vmatpush1.bf16.msra.mxu1 %v1556_v34 }
 0x506   :  { %753 = vmatprep.subr.bf16.mxu1 %v1559_v35 }
 0x509   :  { %754 = vmatpush1.bf16.msra.mxu1 %v1562_v36 }
 0x50a   :  { %855 = vmatprep.subr.bf16.mxu1 %v1517_v20 }
 0x5ac   :  { %v657_v0 = vpop.f32.mrf.mxu1 }
 0x5ad   :  { %v658_v57 = vadd.f32 %v657_v0, %v1594_v55 }
 0x5ae   :  { %v659_v58 = vpop.f32.mrf.mxu1 }
 0x5af   :  { %v1001_v59 = vmul.f32 -1.442695, %v658_v57  ;;  %v660_v60 = vadd.f32 %v659_v58, %v1596_v56 }
 0x5b0   :  { %v661_v61 = vpop.f32.mrf.mxu1 }
 0x5b1   :  { %1222 = vpow2.f32 %v1001_v59  ;;  %v1002_v62 = vmul.f32 -1.442695, %v660_v60  ;;  %v909_v61 = vld [vmem:[#allocation10 + $0x40] sm:$0xff] }
 0x5b2   :  { %v662_v63 = vpop.f32.mrf.mxu1 }
 0x5b3   :  { %1224 = vpow2.f32 %v1002_v62  ;;  %v910_v62 = vld [vmem:[#allocation10 + $0x48] sm:$0xff]  ;;  %v1396_v63 = vmov 0.0  }
 0x5be   :  { %v1223_v11 = vpop.eup %1222 }
 0x5bf   :  { %v670_v13 = vadd.f32 1.0, %v1223_v11 }
 0x5c0   :  { %v1225_v18 = vpop.eup %1224 }
 0x5c1   :  { %1226 = vrcp.f32 %v670_v13  ;;  %v671_v19 = vadd.f32 1.0, %v1225_v18 }
 0x5c3   :  { %1228 = vrcp.f32 %v671_v19 }
 0x5ce   :  { %v1227_v20 = vpop.eup %1226 }
 0x5cf   :  { %vm679_vm14 = vcmp.gt.f32.partialorder %v1227_v20, %v677_v37 }
 0x5d0   :  { %v1229_v40 = vpop.eup %1228  ;;  %vm1007_vm1 = vmpackc.low %vm679_vm14, %vm679_vm14 }
 0x5d1   :  { %vm680_vm15 = vcmp.gt.f32.partialorder %v1229_v40, %v678_v39 }
 0x5d2   :  { %vm1005_vm0 = vmpackc.low %vm680_vm15, %vm680_vm15 }
 0x5d3   :  { %1006 = vmatprep.mubr.msk.bf16.mxu0 %vm1005_vm0, %v1394_v49 }
 0x5d4   :  { %1008 = vmatmul.mubr.msk.bf16.vlgmr.msra.gmra.mxu0 %vm1007_vm1, %v1394_v49 }
 0x5d5   :  { %1118 = vmatpush3.bf16.msra.mxu0 %v1454_v1 }
 0x5d6   :  { %1119 = vmatprep.subr.bf16.mxu0 %v1457_v2 }
 0x5d9   :  { %1120 = vmatpush3.bf16.msra.mxu0 %v1460_v3 }
 0x5da   :  { %1121 = vmatprep.subr.bf16.mxu0 %v1463_v4 }
 0x5dd   :  { %1122 = vmatpush3.bf16.msra.mxu0 %v1466_v5 }
 0x5de   :  { %1123 = vmatprep.subr.bf16.mxu0 %v1469_v6 }
 0x5e1   :  { %1124 = vmatpush3.bf16.msra.mxu0 %v1472_v7 }
 0x5e2   :  { %1125 = vmatprep.subr.bf16.mxu0 %v1475_v8 }
 0x5e5   :  { %1126 = vmatpush3.bf16.msra.mxu0 %v1478_v9 }
 0x5e6   :  { %1127 = vmatprep.subr.bf16.mxu0 %v1481_v10  ;;  %v734_v10 = vld [vmem:[#allocation8 + $0x18] sm:$0xff] }
 0x5e9   :  { %1128 = vmatpush3.bf16.msra.mxu0 %v1483_v12 }
 0x5ea   :  { %1129 = vmatprep.subr.bf16.mxu0 %v1485_v14 }
 0x5ed   :  { %1130 = vmatpush3.bf16.msra.mxu0 %v1490_v15 }
 0x5ee   :  { %1131 = vmatprep.subr.bf16.mxu0 %v1493_v16 }
 0x5f1   :  { %1132 = vmatpush3.bf16.msra.mxu0 %v1496_v17 }
 0x694   :  { %v1111_v1 = vpop.f32.mrf.mxu0 }
 0x696   :  { %v1112_v2 = vpop.f32.mrf.mxu0 }
 0x697   :  { %v1113_v3 = vadd.f32 %v1112_v2, %v1111_v1 }
 0x698   :  { %v1114_v4 = vpop.f32.mrf.mxu0 }
 0x699   :  { %v722_v5 = vadd.f32 %v1113_v3, %v1570_v38 }
 0x69a   :  { %v1115_v6 = vpop.f32.mrf.mxu0 }
 0x69b   :  { %v1009_v7 = vmul.f32 -1.442695, %v722_v5 }
 0x69d   :  { %1230 = vpow2.f32 %v1009_v7 }
 0x6aa   :  { %v1231_v8 = vpop.eup %1230 }
 0x6ab   :  { %v730_v9 = vadd.f32 1.0, %v1231_v8 }
 0x6ad   :  { %1232 = vrcp.f32 %v730_v9 }
 0x6ba   :  { %v1233_v12 = vpop.eup %1232 }
 0x6bb   :  { %vm735_vm2 = vcmp.gt.f32.partialorder %v1233_v12, %v734_v10 }
 0x6bc   :  { %vm1011_vm3 = vmpackc.low %vm735_vm2, %vm735_vm2 }
 0x6bd   :  { %1012 = vmatmul.mubr.msk.bf16.vlgmr.msra.gmra.mxu1 %vm1011_vm3, %v1394_v49 }
 0x6be   :  { %856 = vmatpush1.bf16.msra.mxu1 %v1519_v21  ;;  %887 = vmatprep.mubr.bf16.mxu1 %v1393_v33 }
 0x6bf   :  { %857 = vmatprep.subr.bf16.mxu1 %v1523_v22 }
 0x6c2   :  { %858 = vmatpush1.bf16.msra.mxu1 %v1525_v23 }
 0x6c3   :  { %859 = vmatprep.subr.bf16.mxu1 %v1529_v24 }
 0x6c6   :  { %860 = vmatpush1.bf16.msra.mxu1 %v1531_v25 }
 0x6c7   :  { %861 = vmatprep.subr.bf16.mxu1 %v1535_v26 }
 0x6ca   :  { %862 = vmatpush1.bf16.msra.mxu1 %v1537_v27 }
 0x6cb   :  { %863 = vmatprep.subr.bf16.mxu1 %v1541_v28 }
 0x6ce   :  { %864 = vmatpush1.bf16.msra.mxu1 %v1543_v29  ;;  %v793_v29 = vld [vmem:[#allocation10 + $0x30] sm:$0xff] }
 0x6cf   :  { %865 = vmatprep.subr.bf16.mxu1 %v1546_v30 }
 0x6d2   :  { %866 = vmatpush1.bf16.msra.mxu1 %v1549_v31  ;;  %v794_v31 = vld [vmem:[#allocation10 + $0x38] sm:$0xff] }
 0x6d3   :  { %867 = vmatprep.subr.bf16.mxu1 %v1552_v32 }
 0x6d6   :  { %868 = vmatpush1.bf16.msra.mxu1 %v1556_v34 }
 0x6d7   :  { %869 = vmatprep.subr.bf16.mxu1 %v1559_v35 }
 0x6da   :  { %870 = vmatpush1.bf16.msra.mxu1 %v1562_v36 }
 0x77d   :  { %v773_v14 = vpop.f32.mrf.mxu1 }
 0x77e   :  { %v774_v15 = vadd.f32 %v773_v14, %v1594_v55 }
 0x77f   :  { %v775_v16 = vpop.f32.mrf.mxu1 }
 0x780   :  { %v1013_v17 = vmul.f32 -1.442695, %v774_v15  ;;  %v776_v21 = vadd.f32 %v775_v16, %v1596_v56 }
 0x781   :  { %v777_v22 = vpop.f32.mrf.mxu1 }
 0x782   :  { %1234 = vpow2.f32 %v1013_v17  ;;  %v1014_v23 = vmul.f32 -1.442695, %v776_v21 }
 0x783   :  { %v778_v24 = vpop.f32.mrf.mxu1 }
 0x784   :  { %1236 = vpow2.f32 %v1014_v23 }
 0x78f   :  { %v1235_v25 = vpop.eup %1234 }
 0x790   :  { %v786_v26 = vadd.f32 1.0, %v1235_v25 }
 0x791   :  { %v1237_v27 = vpop.eup %1236 }
 0x792   :  { %1238 = vrcp.f32 %v786_v26  ;;  %v787_v28 = vadd.f32 1.0, %v1237_v27 }
 0x794   :  { %1240 = vrcp.f32 %v787_v28 }
 0x79f   :  { %v1239_v30 = vpop.eup %1238 }
 0x7a0   :  { %vm795_vm4 = vcmp.gt.f32.partialorder %v1239_v30, %v793_v29 }
 0x7a1   :  { %v1241_v32 = vpop.eup %1240  ;;  %vm1019_vm7 = vmpackc.low %vm795_vm4, %vm795_vm4 }
 0x7a2   :  { %vm796_vm5 = vcmp.gt.f32.partialorder %v1241_v32, %v794_v31 }
 0x7a3   :  { %vm1017_vm6 = vmpackc.low %vm796_vm5, %vm796_vm5 }
 0x7a4   :  { %1018 = vmatprep.mubr.msk.bf16.mxu0 %vm1017_vm6, %v1394_v49 }
 0x7a5   :  { %1020 = vmatmul.mubr.msk.bf16.vlgmr.msra.gmra.mxu0 %vm1019_vm7, %v1394_v49 }
 0x865   :  { %v1133_v33 = vpop.f32.mrf.mxu0 }
 0x867   :  { %v1134_v34 = vpop.f32.mrf.mxu0 }
 0x868   :  { %v1135_v35 = vadd.f32 %v1134_v34, %v1133_v33 }
 0x869   :  { %v1136_v36 = vpop.f32.mrf.mxu0 }
 0x86a   :  { %v838_v41 = vadd.f32 %v1135_v35, %v1570_v38 }
 0x86b   :  { %v1137_v42 = vpop.f32.mrf.mxu0 }
 0x86c   :  { %v1021_v43 = vmul.f32 -1.442695, %v838_v41 }
 0x86e   :  { %1242 = vpow2.f32 %v1021_v43 }
 0x87b   :  { %v1243_v44 = vpop.eup %1242 }
 0x87c   :  { %v846_v45 = vadd.f32 1.0, %v1243_v44 }
 0x87e   :  { %1244 = vrcp.f32 %v846_v45 }
 0x88b   :  { %v1245_v47 = vpop.eup %1244 }
 0x88c   :  { %vm851_vm8 = vcmp.gt.f32.partialorder %v1245_v47, %v850_v46 }
 0x88d   :  { %vm1023_vm9 = vmpackc.low %vm851_vm8, %vm851_vm8 }
 0x88e   :  { %1024 = vmatmul.mubr.msk.bf16.vlgmr.msra.gmra.mxu1 %vm1023_vm9, %v1394_v49 }
 0x94e   :  { %v889_v48 = vpop.f32.mrf.mxu1 }
 0x94f   :  { %v890_v50 = vadd.f32 %v889_v48, %v1594_v55 }
 0x950   :  { %v891_v51 = vpop.f32.mrf.mxu1 }
 0x951   :  { %v1025_v52 = vmul.f32 -1.442695, %v890_v50  ;;  %v892_v53 = vadd.f32 %v891_v51, %v1596_v56 }
 0x952   :  { %v893_v38 = vpop.f32.mrf.mxu1 }
 0x953   :  { %1246 = vpow2.f32 %v1025_v52  ;;  %v1026_v54 = vmul.f32 -1.442695, %v892_v53 }
 0x954   :  { %v894_v0 = vpop.f32.mrf.mxu1 }
 0x955   :  { %1248 = vpow2.f32 %v1026_v54 }
 0x960   :  { %v1247_v57 = vpop.eup %1246 }
 0x961   :  { %v902_v58 = vadd.f32 1.0, %v1247_v57 }
 0x962   :  { %v1249_v59 = vpop.eup %1248 }
 0x963   :  { %1250 = vrcp.f32 %v902_v58  ;;  %v903_v60 = vadd.f32 1.0, %v1249_v59 }
 0x965   :  { %1252 = vrcp.f32 %v903_v60 }
 0x970   :  { %v1251_v49 = vpop.eup %1250 }
 0x971   :  { %vm911_vm10 = vcmp.gt.f32.partialorder %v1251_v49, %v909_v61 }
 0x972   :  { %v1253_v55 = vpop.eup %1252  ;;  %v1027_v56 = vsel %vm911_vm10, 1.0, %v1396_v63 }
 0x973   :  { %vm912_vm11 = vcmp.gt.f32.partialorder %v1253_v55, %v910_v62  ;;  %921 = vst [vmem:[#allocation11] sm:$0xff] %v1027_v56 }
 0x974   :  { %v1028_v11 = vsel %vm912_vm11, 1.0, %v1396_v63 }
 0x975   :  { %922 = vst [vmem:[#allocation11 + $0x8] sm:$0xff] %v1028_v11 }
 0x976   :  { %1365 = shalt.err (!%p1362_p1)
}
 0x977   :  { %932 = dma.vmem_to_hbm [thread:$0]  %s930_s30, 256, %s1731_s7, [#allocation4]  }
 0x978   :  { %1380 = dma.done.wait [#allocation4], 256  }
 0x979   :  { %1381 = vsyncadd [#allocation4], 4294967040 }
 0x97a   :  { %936 = vsyncpa [#allocation3], 1 }
 0x97b   :  { %937 = vsyncpa [#allocation6], 1 }
 0x97c   :  { %938 = vsyncpa [#allocation9], 1 }
 0x97d   :  { %939 = vsyncpa [#allocation4], 1 }

</bundles_post_ra>
